<compile_context>
chip_gen: v5e
topology: v5e:2x2
jax: 0.10.0
libtpu: 0.0.40
codegen_flags: <defaults>
</compile_context>

<pallas_src>
import functools

import jax
import jax.numpy as jnp
from jax.experimental import pallas as pl
from jax.experimental.pallas import tpu as pltpu


@functools.lru_cache(maxsize=None)
def _vmem_limit_bytes():
    # ~half of physical VMEM: 64 MiB on v5e/v6e (128 MiB parts), 32 MiB on v7x.
    try:
        cap = int(pltpu.get_tpu_info().vmem_capacity_bytes)
    except Exception:  # robust fallback (interpret mode / attr differences)
        cap = 64 * 1024 * 1024
    return int(min(96 * 1024 * 1024, max(32 * 1024 * 1024, cap // 2)))


def _fold_dw_pw(dw, pw):
    """dw (3,3,Cin), pw (Cin,Cout) -> W9 (9,Cin,Cout), W9[t,c,co]=dw[t,c]*pw[c,co]."""
    cin = dw.shape[-1]
    return dw.reshape(9, cin, 1) * pw[None, :, :]


# ============================================================================
# Fused block kernel:
#   [per-channel affine + ReLU (prev BN folded in)] -> zero pad ring (VMEM) ->
#   depthwise 3x3 + pointwise 1x1 as 9 accumulating MXU matmuls (folded W9) ->
#   BN partial stats -> (optionally channel-first) store.
# One batch element per grid step; grid axis is "parallel".
# ============================================================================
def _fused_block_kernel(*refs, stride, apply_input_affine, transpose_out):
    if apply_input_affine:
        x_ref, w9_ref, isc_ref, ish_ref, y_ref, st_ref, xpad_ref = refs
    else:
        x_ref, w9_ref, y_ref, st_ref, xpad_ref = refs
        isc_ref = ish_ref = None

    _, H, W, Cin = x_ref.shape
    Hp, Wp = H + 2, W + 2
    Ho = (H - 1) // stride + 1          # k=3, pad=1
    Wo = (W - 1) // stride + 1
    M = Ho * Wo
    Cout = w9_ref.shape[-1]

    # Cast to f32 on load (bf16 HBM intermediates stay f32 in-kernel; safe on
    # v5e).  Block 1 skips the identity affine entirely (review: dead VPU work
    # on the largest tensor in the pipeline).
    x = x_ref[0].astype(jnp.float32)
    if apply_input_affine:
        x = jnp.maximum(x * isc_ref[...] + ish_ref[...], 0.0)

    # padding=1: zero only the 1-pixel ring (cheap masked row/col stores), not
    # the whole slab; the interior is fully overwritten every step.  Done per
    # step (not @pl.when(pid==0)) so it remains correct when the parallel
    # batch axis is core-sharded (each core owns its own scratch).
    xpad_ref[0:1, :, :] = jnp.zeros((1, Wp, Cin), jnp.float32)
    xpad_ref[H + 1:H + 2, :, :] = jnp.zeros((1, Wp, Cin), jnp.float32)
    xpad_ref[:, 0:1, :] = jnp.zeros((Hp, 1, Cin), jnp.float32)
    xpad_ref[:, W + 1:W + 2, :] = jnp.zeros((Hp, 1, Cin), jnp.float32)
    xpad_ref[pl.ds(1, H), pl.ds(1, W), :] = x

    # dw3x3 + pw1x1 fused onto the MXU: y = sum_t tap_t @ W9[t], where
    # W9[t] = diag(dw[t]) @ pw was folded in the wrapper.  Stride is baked
    # into the tap reads (no dense stride-1 compute, no strided writeback).
    y = jnp.zeros((M, Cout), jnp.float32)
    for ki in range(3):
        for kj in range(3):
            if stride == 1:
                tap = xpad_ref[ki:ki + Ho, kj:kj + Wo, :]
            else:
                tap = xpad_ref[pl.ds(ki, Ho, stride), pl.ds(kj, Wo, stride), :]
            # (Ho,Wo,Cin)->(M,Cin) merges leading dims only (layout-free for
            # Wo % 8 == 0, which holds here).
            y = y + jnp.dot(tap.reshape(M, Cin), w9_ref[ki * 3 + kj],
                            preferred_element_type=jnp.float32)

    # BN partial statistics gathered while y is still resident in VMEM
    # (finalized to a per-channel scale/shift outside: C-sized math only).
    st_ref[0, 0:1, :] = jnp.sum(y, axis=0, keepdims=True)
    st_ref[0, 1:2, :] = jnp.sum(y * y, axis=0, keepdims=True)

    if transpose_out:
        # Channel-first store so the final BN+ReLU pass writes NCHW directly
        # (no wrapper-side XLA transpose over the activation).
        y_ref[0] = y.T.astype(y_ref.dtype)
    else:
        y_ref[0] = y.astype(y_ref.dtype)


def _fused_block(x, w9, in_scale, in_shift, *, stride, transpose_out,
                 interm_dtype):
    """x: (N, H, W, Cin) NHWC.  Returns (y_raw, stats).

    y_raw: (N, Cout, Ho*Wo) if transpose_out else (N, Ho*Wo, Cout).
    stats: (N, 2, Cout) per-batch-element [sum, sum_sq] over pixels.
    """
    N, H, W, Cin = x.shape
    Cout = w9.shape[-1]
    Ho = (H - 1) // stride + 1
    Wo = (W - 1) // stride + 1
    M = Ho * Wo
    apply_affine = in_scale is not None

    kern = functools.partial(_fused_block_kernel, stride=stride,
                             apply_input_affine=apply_affine,
                             transpose_out=transpose_out)

    in_specs = [
        pl.BlockSpec((1, H, W, Cin), lambda n: (n, 0, 0, 0)),
        pl.BlockSpec((9, Cin, Cout), lambda n: (0, 0, 0)),
    ]
    args = [x, w9]
    if apply_affine:
        in_specs += [pl.BlockSpec((1, Cin), lambda n: (0, 0)),
                     pl.BlockSpec((1, Cin), lambda n: (0, 0))]
        args += [in_scale, in_shift]

    if transpose_out:
        y_shape, y_block = (N, Cout, M), (1, Cout, M)
    else:
        y_shape, y_block = (N, M, Cout), (1, M, Cout)

    in_isz = jnp.dtype(x.dtype).itemsize
    out_isz = jnp.dtype(interm_dtype).itemsize
    flops = N * (2 * 9 * M * Cin * Cout
                 + (3 * H * W * Cin if apply_affine else 0)
                 + 3 * M * Cout)
    bytes_accessed = (N * H * W * Cin * in_isz
                      + 9 * Cin * Cout * 4
                      + (2 * Cin * 4 if apply_affine else 0)
                      + N * M * Cout * out_isz
                      + N * 2 * Cout * 4)

    return pl.pallas_call(
        kern,
        out_shape=(
            jax.ShapeDtypeStruct(y_shape, interm_dtype),
            jax.ShapeDtypeStruct((N, 2, Cout), jnp.float32),
        ),
        grid=(N,),
        in_specs=in_specs,
        out_specs=(
            pl.BlockSpec(y_block, lambda n: (n, 0, 0)),
            pl.BlockSpec((1, 2, Cout), lambda n: (n, 0, 0)),
        ),
        scratch_shapes=[pltpu.VMEM((H + 2, W + 2, Cin), jnp.float32)],
        compiler_params=pltpu.CompilerParams(
            dimension_semantics=("parallel",),
            vmem_limit_bytes=_vmem_limit_bytes(),
        ),
        cost_estimate=pl.CostEstimate(flops=flops, transcendentals=0,
                                      bytes_accessed=bytes_accessed),
    )(*args)


# ============================================================================
# Final BN2 + ReLU: channel-first elementwise pass, writes NCHW-flat output.
# ============================================================================
def _final_bn_relu_kernel(y_ref, sc_ref, sh_ref, o_ref):
    y = y_ref[...].astype(jnp.float32)                   # (1, C, tm)
    o_ref[...] = jnp.maximum(y * sc_ref[...] + sh_ref[...], 0.0).astype(o_ref.dtype)


def _final_bn_relu(y, scale, shift):
    """y: (N, C, M) channel-first; scale/shift: (C, 1).  Returns f32 (N, C, M)."""
    N, C, M = y.shape
    tm = M
    for cand in (4096, 2048, 1024, 512, 256, 128):       # pixel tiling at prod. sizes
        if M > cand and M % cand == 0:
            tm = cand
            break
    in_isz = jnp.dtype(y.dtype).itemsize
    return pl.pallas_call(
        _final_bn_relu_kernel,
        out_shape=jax.ShapeDtypeStruct((N, C, M), jnp.float32),
        grid=(N, M // tm),
        in_specs=[
            pl.BlockSpec((1, C, tm), lambda n, m: (n, 0, m)),
            pl.BlockSpec((C, 1), lambda n, m: (0, 0)),
            pl.BlockSpec((C, 1), lambda n, m: (0, 0)),
        ],
        out_specs=pl.BlockSpec((1, C, tm), lambda n, m: (n, 0, m)),
        compiler_params=pltpu.CompilerParams(
            dimension_semantics=("parallel", "parallel"),
            vmem_limit_bytes=_vmem_limit_bytes(),
        ),
        cost_estimate=pl.CostEstimate(
            flops=3 * N * C * M, transcendentals=0,
            bytes_accessed=N * C * M * (in_isz + 4) + 2 * C * 4),
    )(y, scale, shift)


def _bn_scale_shift(stats, gamma, beta, count, eps):
    """Fold training-mode BN (biased batch variance) into per-channel scale/shift."""
    s = jnp.sum(stats[:, 0, :], axis=0)
    sq = jnp.sum(stats[:, 1, :], axis=0)
    mean = s / count
    var = jnp.maximum(sq / count - mean * mean, 0.0)
    scale = gamma * jax.lax.rsqrt(var + eps)
    shift = beta - mean * scale
    return scale, shift


# ============================================================================
# SepConv forward (NCHW in / NCHW out)
# ============================================================================
def sepconv_forward(x_nchw, p, eps=1e-5, interm_dtype=jnp.float32):
    # One XLA transpose remains on the input side; the output side is written
    # NCHW directly by the kernels (block 2 stores channel-first).
    # TODO(synk): consume NCHW directly in block 1 to drop this transpose too.
    x = jnp.transpose(x_nchw, (0, 2, 3, 1))              # NCHW -> NHWC
    N, H, W, Cin = x.shape
    Cout = p["pw2"].shape[1]
    Ho, Wo = (H - 1) // 2 + 1, (W - 1) // 2 + 1
    count = N * Ho * Wo

    w9_1 = _fold_dw_pw(p["dw1"], p["pw1"])               # (9, Cin, Cin)
    w9_2 = _fold_dw_pw(p["dw2"], p["pw2"])               # (9, Cin, Cout)

    # Block 1: pad + dw3x3(s=2) + pw1x1 on the MXU; BN1 stats in-kernel.
    y1, st1 = _fused_block(x, w9_1, None, None, stride=2,
                           transpose_out=False, interm_dtype=interm_dtype)
    sc1, sh1 = _bn_scale_shift(st1, p["g1"], p["b1"], count, eps)

    # Block 2: BN1+ReLU folded into the input affine, pad + dw3x3(s=1) +
    # pw1x1(Cin->Cout); BN2 stats in-kernel; output stored channel-first.
    y2t, st2 = _fused_block(y1.reshape(N, Ho, Wo, Cin), w9_2,
                            sc1.reshape(1, Cin), sh1.reshape(1, Cin),
                            stride=1, transpose_out=True,
                            interm_dtype=interm_dtype)
    sc2, sh2 = _bn_scale_shift(st2, p["g2"], p["b2"], count, eps)

    # Final BN2 + ReLU, lane-dense along pixels, already NCHW-flat.
    out = _final_bn_relu(y2t, sc2.reshape(Cout, 1), sh2.reshape(Cout, 1))
    return out.reshape(N, Cout, Ho, Wo)                  # free trailing-dim split


def init_params(key, c_in, c_out):
    # PyTorch shapes: dw (C,1,3,3) groups=C, pw (Cout,Cin,1,1), BN gamma/beta (C,).
    # Stored directly in kernel layout: dw -> (3,3,C), pw -> (Cin,Cout).
    k1, k2, k3, k4 = jax.random.split(key, 4)
    return {
        "dw1": jax.random.normal(k1, (3, 3, c_in), jnp.float32) * 0.2,
        "pw1": jax.random.normal(k2, (c_in, c_in), jnp.float32) * 0.2,
        "dw2": jax.random.normal(k3, (3, 3, c_in), jnp.float32) * 0.2,
        "pw2": jax.random.normal(k4, (c_in, c_out), jnp.float32) * 0.2,
        "g1": jnp.ones((c_in,), jnp.float32),
        "b1": jnp.zeros((c_in,), jnp.float32),
        "g2": jnp.ones((c_out,), jnp.float32),
        "b2": jnp.zeros((c_out,), jnp.float32),
    }


# ----------------------------------------------------------------------------
# Pure-JAX reference (correctness check only)
# ----------------------------------------------------------------------------
def _ref_forward(x_nchw, p, eps=1e-5):
    def dw(x, w, stride):
        C = x.shape[1]
        wk = jnp.transpose(w, (2, 0, 1))[:, None]          # (C,1,3,3)
        return jax.lax.conv_general_dilated(
            x, wk, (stride, stride), ((1, 1), (1, 1)),
            dimension_numbers=("NCHW", "OIHW", "NCHW"),
            feature_group_count=C, precision=jax.lax.Precision.HIGHEST)

    def pw(x, w):
        wk = jnp.transpose(w, (1, 0))[:, :, None, None]    # (Cout,Cin,1,1)
        return jax.lax.conv_general_dilated(
            x, wk, (1, 1), ((0, 0), (0, 0)),
            dimension_numbers=("NCHW", "OIHW", "NCHW"),
            precision=jax.lax.Precision.HIGHEST)

    def bn_relu(x, g, b):
        mu = jnp.mean(x, axis=(0, 2, 3), keepdims=True)
        var = jnp.mean(jnp.square(x - mu), axis=(0, 2, 3), keepdims=True)
        y = (x - mu) * jax.lax.rsqrt(var + eps)
        y = y * g.reshape(1, -1, 1, 1) + b.reshape(1, -1, 1, 1)
        return jnp.maximum(y, 0.0)

    y = bn_relu(pw(dw(x_nchw, p["dw1"], 2), p["pw1"]), p["g1"], p["b1"])
    z = bn_relu(pw(dw(y, p["dw2"], 1), p["pw2"]), p["g2"], p["b2"])
    return z


if __name__ == "__main__":
    N, C_IN, H, W = 2, 4, 16, 16
    C_OUT = 8

    key = jax.random.PRNGKey(0)
    kx, kp = jax.random.split(key)
    x = jax.random.normal(kx, (N, C_IN, H, W), jnp.float32)
    params = init_params(kp, C_IN, C_OUT)

    ref = jax.block_until_ready(_ref_forward(x, params))

    # f32 intermediates: tight numerical check.
    fwd_f32 = jax.jit(lambda a, p: sepconv_forward(a, p, interm_dtype=jnp.float32))
    out = jax.block_until_ready(fwd_f32(x, params))
    assert out.shape == (N, C_OUT, H // 2, W // 2), out.shape
    max_err = float(jnp.max(jnp.abs(out - ref)))
    assert jnp.allclose(out, ref, atol=2e-3, rtol=2e-3), max_err

    # bf16 inter-block HBM intermediates (halves activation HBM traffic on
    # v6e/v7x; in-kernel math stays f32 so it is also valid on v5e).  Looser
    # tolerance: BN stats are taken pre-rounding while the stored activation
    # is bf16 (documented stats/value mismatch).
    fwd_bf16 = jax.jit(lambda a, p: sepconv_forward(a, p, interm_dtype=jnp.bfloat16))
    out_bf = jax.block_until_ready(fwd_bf16(x, params))
    max_err_bf = float(jnp.max(jnp.abs(out_bf - ref)))
    assert jnp.allclose(out_bf, ref, atol=5e-2, rtol=5e-2), max_err_bf

    print("KERNEL_OK")
</pallas_src>

<mosaic_0001>
module attributes {stable_mosaic.version = 11 : i64} {
  func.func @_fused_block_kernel(%arg0: i32, %arg1: memref<1x16x16x4xf32, #tpu.memory_space<vmem>>, %arg2: memref<9x4x4xf32, #tpu.memory_space<vmem>>, %arg3: memref<1x64x4xf32, #tpu.memory_space<vmem>>, %arg4: memref<1x2x4xf32, #tpu.memory_space<vmem>>, %arg5: memref<18x18x4xf32, #tpu.memory_space<vmem>>) attributes {dimension_semantics = [#tpu.dimension_semantics<parallel>], iteration_bounds = array<i64: 2>, scalar_prefetch = 0 : i64, scratch_operands = 1 : i64, tpu.core_type = #tpu.core_type<tc>, window_params = [{transform_indices = @transform_0, window_bounds = array<i64: 1, 16, 16, 4>}, {pipeline_mode = #tpu.pipeline_mode<synchronous>, transform_indices = @transform_1, window_bounds = array<i64: 9, 4, 4>}, {transform_indices = @transform_2, window_bounds = array<i64: 1, 64, 4>}, {transform_indices = @transform_3, window_bounds = array<i64: 1, 2, 4>}]} {
    %c0 = arith.constant 0 : index
    %c0_0 = arith.constant 0 : index
    %c0_1 = arith.constant 0 : index
    %c0_2 = arith.constant 0 : index
    %0 = vector.load %arg1[%c0, %c0_0, %c0_1, %c0_2] : memref<1x16x16x4xf32, #tpu.memory_space<vmem>>, vector<1x16x16x4xf32>
    %1 = vector.shape_cast %0 : vector<1x16x16x4xf32> to vector<16x16x4xf32>
    %cst = arith.constant 0.000000e+00 : f32
    %2 = vector.broadcast %cst : f32 to vector<1x18x4xf32>
    %c0_3 = arith.constant 0 : index
    %c0_4 = arith.constant 0 : index
    %c0_5 = arith.constant 0 : index
    %3 = vector.load %arg5[%c0_3, %c0_4, %c0_5] : memref<18x18x4xf32, #tpu.memory_space<vmem>>, vector<1x18x4xf32>
    tpu.vector_store %arg5[%c0_3, %c0_4, %c0_5], %2 {strides = array<i32>} : memref<18x18x4xf32, #tpu.memory_space<vmem>>, vector<1x18x4xf32>,
    %cst_6 = arith.constant 0.000000e+00 : f32
    %4 = vector.broadcast %cst_6 : f32 to vector<1x18x4xf32>
    %c17 = arith.constant 17 : index
    %c0_7 = arith.constant 0 : index
    %c0_8 = arith.constant 0 : index
    %5 = vector.load %arg5[%c17, %c0_7, %c0_8] : memref<18x18x4xf32, #tpu.memory_space<vmem>>, vector<1x18x4xf32>
    tpu.vector_store %arg5[%c17, %c0_7, %c0_8], %4 {strides = array<i32>} : memref<18x18x4xf32, #tpu.memory_space<vmem>>, vector<1x18x4xf32>,
    %cst_9 = arith.constant 0.000000e+00 : f32
    %6 = vector.broadcast %cst_9 : f32 to vector<18x1x4xf32>
    %c0_10 = arith.constant 0 : index
    %c0_11 = arith.constant 0 : index
    %c0_12 = arith.constant 0 : index
    %7 = vector.load %arg5[%c0_10, %c0_11, %c0_12] : memref<18x18x4xf32, #tpu.memory_space<vmem>>, vector<18x1x4xf32>
    tpu.vector_store %arg5[%c0_10, %c0_11, %c0_12], %6 {strides = array<i32>} : memref<18x18x4xf32, #tpu.memory_space<vmem>>, vector<18x1x4xf32>,
    %cst_13 = arith.constant 0.000000e+00 : f32
    %8 = vector.broadcast %cst_13 : f32 to vector<18x1x4xf32>
    %c0_14 = arith.constant 0 : index
    %c17_15 = arith.constant 17 : index
    %c0_16 = arith.constant 0 : index
    %9 = vector.load %arg5[%c0_14, %c17_15, %c0_16] : memref<18x18x4xf32, #tpu.memory_space<vmem>>, vector<18x1x4xf32>
    tpu.vector_store %arg5[%c0_14, %c17_15, %c0_16], %8 {strides = array<i32>} : memref<18x18x4xf32, #tpu.memory_space<vmem>>, vector<18x1x4xf32>,
    %c1 = arith.constant 1 : index
    %c1_17 = arith.constant 1 : index
    %c0_18 = arith.constant 0 : index
    %10 = vector.load %arg5[%c1, %c1_17, %c0_18] : memref<18x18x4xf32, #tpu.memory_space<vmem>>, vector<16x16x4xf32>
    tpu.vector_store %arg5[%c1, %c1_17, %c0_18], %1 {strides = array<i32>} : memref<18x18x4xf32, #tpu.memory_space<vmem>>, vector<16x16x4xf32>,
    %cst_19 = arith.constant 0.000000e+00 : f32
    %11 = vector.broadcast %cst_19 : f32 to vector<64x4xf32>
    %c0_20 = arith.constant 0 : index
    %c0_21 = arith.constant 0 : index
    %c0_22 = arith.constant 0 : index
    %12 = tpu.strided_load %arg5[%c0_20, %c0_21, %c0_22] {strides = array<i32: 2, 2, 1>} : memref<18x18x4xf32, #tpu.memory_space<vmem>>, vector<8x8x4xf32>
    %13 = vector.shape_cast %12 : vector<8x8x4xf32> to vector<64x4xf32>
    %c0_23 = arith.constant 0 : index
    %c0_24 = arith.constant 0 : index
    %c0_25 = arith.constant 0 : index
    %14 = vector.load %arg2[%c0_23, %c0_24, %c0_25] : memref<9x4x4xf32, #tpu.memory_space<vmem>>, vector<1x4x4xf32>
    %15 = vector.shape_cast %14 : vector<1x4x4xf32> to vector<4x4xf32>
    %cst_26 = arith.constant dense<0.000000e+00> : vector<64x4xf32>
    %16 = tpu.matmul %13, %15, %cst_26 {dimension_numbers = #tpu.dot_dimension_numbers<[1], [0], [0], [1], [0, 0, 1, 1], [], []>} : vector<64x4xf32>, vector<4x4xf32>, vector<64x4xf32> -> vector<64x4xf32>
    %17 = arith.addf %11, %16 : vector<64x4xf32>
    %c0_27 = arith.constant 0 : index
    %c1_28 = arith.constant 1 : index
    %c0_29 = arith.constant 0 : index
    %18 = tpu.strided_load %arg5[%c0_27, %c1_28, %c0_29] {strides = array<i32: 2, 2, 1>} : memref<18x18x4xf32, #tpu.memory_space<vmem>>, vector<8x8x4xf32>
    %19 = vector.shape_cast %18 : vector<8x8x4xf32> to vector<64x4xf32>
    %c1_30 = arith.constant 1 : index
    %c0_31 = arith.constant 0 : index
    %c0_32 = arith.constant 0 : index
    %20 = vector.load %arg2[%c1_30, %c0_31, %c0_32] : memref<9x4x4xf32, #tpu.memory_space<vmem>>, vector<1x4x4xf32>
    %21 = vector.shape_cast %20 : vector<1x4x4xf32> to vector<4x4xf32>
    %cst_33 = arith.constant dense<0.000000e+00> : vector<64x4xf32>
    %22 = tpu.matmul %19, %21, %cst_33 {dimension_numbers = #tpu.dot_dimension_numbers<[1], [0], [0], [1], [0, 0, 1, 1], [], []>} : vector<64x4xf32>, vector<4x4xf32>, vector<64x4xf32> -> vector<64x4xf32>
    %23 = arith.addf %17, %22 : vector<64x4xf32>
    %c0_34 = arith.constant 0 : index
    %c2 = arith.constant 2 : index
    %c0_35 = arith.constant 0 : index
    %24 = tpu.strided_load %arg5[%c0_34, %c2, %c0_35] {strides = array<i32: 2, 2, 1>} : memref<18x18x4xf32, #tpu.memory_space<vmem>>, vector<8x8x4xf32>
    %25 = vector.shape_cast %24 : vector<8x8x4xf32> to vector<64x4xf32>
    %c2_36 = arith.constant 2 : index
    %c0_37 = arith.constant 0 : index
    %c0_38 = arith.constant 0 : index
    %26 = vector.load %arg2[%c2_36, %c0_37, %c0_38] : memref<9x4x4xf32, #tpu.memory_space<vmem>>, vector<1x4x4xf32>
    %27 = vector.shape_cast %26 : vector<1x4x4xf32> to vector<4x4xf32>
    %cst_39 = arith.constant dense<0.000000e+00> : vector<64x4xf32>
    %28 = tpu.matmul %25, %27, %cst_39 {dimension_numbers = #tpu.dot_dimension_numbers<[1], [0], [0], [1], [0, 0, 1, 1], [], []>} : vector<64x4xf32>, vector<4x4xf32>, vector<64x4xf32> -> vector<64x4xf32>
    %29 = arith.addf %23, %28 : vector<64x4xf32>
    %c1_40 = arith.constant 1 : index
    %c0_41 = arith.constant 0 : index
    %c0_42 = arith.constant 0 : index
    %30 = tpu.strided_load %arg5[%c1_40, %c0_41, %c0_42] {strides = array<i32: 2, 2, 1>} : memref<18x18x4xf32, #tpu.memory_space<vmem>>, vector<8x8x4xf32>
    %31 = vector.shape_cast %30 : vector<8x8x4xf32> to vector<64x4xf32>
    %c3 = arith.constant 3 : index
    %c0_43 = arith.constant 0 : index
    %c0_44 = arith.constant 0 : index
    %32 = vector.load %arg2[%c3, %c0_43, %c0_44] : memref<9x4x4xf32, #tpu.memory_space<vmem>>, vector<1x4x4xf32>
    %33 = vector.shape_cast %32 : vector<1x4x4xf32> to vector<4x4xf32>
    %cst_45 = arith.constant dense<0.000000e+00> : vector<64x4xf32>
    %34 = tpu.matmul %31, %33, %cst_45 {dimension_numbers = #tpu.dot_dimension_numbers<[1], [0], [0], [1], [0, 0, 1, 1], [], []>} : vector<64x4xf32>, vector<4x4xf32>, vector<64x4xf32> -> vector<64x4xf32>
    %35 = arith.addf %29, %34 : vector<64x4xf32>
    %c1_46 = arith.constant 1 : index
    %c1_47 = arith.constant 1 : index
    %c0_48 = arith.constant 0 : index
    %36 = tpu.strided_load %arg5[%c1_46, %c1_47, %c0_48] {strides = array<i32: 2, 2, 1>} : memref<18x18x4xf32, #tpu.memory_space<vmem>>, vector<8x8x4xf32>
    %37 = vector.shape_cast %36 : vector<8x8x4xf32> to vector<64x4xf32>
    %c4 = arith.constant 4 : index
    %c0_49 = arith.constant 0 : index
    %c0_50 = arith.constant 0 : index
    %38 = vector.load %arg2[%c4, %c0_49, %c0_50] : memref<9x4x4xf32, #tpu.memory_space<vmem>>, vector<1x4x4xf32>
    %39 = vector.shape_cast %38 : vector<1x4x4xf32> to vector<4x4xf32>
    %cst_51 = arith.constant dense<0.000000e+00> : vector<64x4xf32>
    %40 = tpu.matmul %37, %39, %cst_51 {dimension_numbers = #tpu.dot_dimension_numbers<[1], [0], [0], [1], [0, 0, 1, 1], [], []>} : vector<64x4xf32>, vector<4x4xf32>, vector<64x4xf32> -> vector<64x4xf32>
    %41 = arith.addf %35, %40 : vector<64x4xf32>
    %c1_52 = arith.constant 1 : index
    %c2_53 = arith.constant 2 : index
    %c0_54 = arith.constant 0 : index
    %42 = tpu.strided_load %arg5[%c1_52, %c2_53, %c0_54] {strides = array<i32: 2, 2, 1>} : memref<18x18x4xf32, #tpu.memory_space<vmem>>, vector<8x8x4xf32>
    %43 = vector.shape_cast %42 : vector<8x8x4xf32> to vector<64x4xf32>
    %c5 = arith.constant 5 : index
    %c0_55 = arith.constant 0 : index
    %c0_56 = arith.constant 0 : index
    %44 = vector.load %arg2[%c5, %c0_55, %c0_56] : memref<9x4x4xf32, #tpu.memory_space<vmem>>, vector<1x4x4xf32>
    %45 = vector.shape_cast %44 : vector<1x4x4xf32> to vector<4x4xf32>
    %cst_57 = arith.constant dense<0.000000e+00> : vector<64x4xf32>
    %46 = tpu.matmul %43, %45, %cst_57 {dimension_numbers = #tpu.dot_dimension_numbers<[1], [0], [0], [1], [0, 0, 1, 1], [], []>} : vector<64x4xf32>, vector<4x4xf32>, vector<64x4xf32> -> vector<64x4xf32>
    %47 = arith.addf %41, %46 : vector<64x4xf32>
    %c2_58 = arith.constant 2 : index
    %c0_59 = arith.constant 0 : index
    %c0_60 = arith.constant 0 : index
    %48 = tpu.strided_load %arg5[%c2_58, %c0_59, %c0_60] {strides = array<i32: 2, 2, 1>} : memref<18x18x4xf32, #tpu.memory_space<vmem>>, vector<8x8x4xf32>
    %49 = vector.shape_cast %48 : vector<8x8x4xf32> to vector<64x4xf32>
    %c6 = arith.constant 6 : index
    %c0_61 = arith.constant 0 : index
    %c0_62 = arith.constant 0 : index
    %50 = vector.load %arg2[%c6, %c0_61, %c0_62] : memref<9x4x4xf32, #tpu.memory_space<vmem>>, vector<1x4x4xf32>
    %51 = vector.shape_cast %50 : vector<1x4x4xf32> to vector<4x4xf32>
    %cst_63 = arith.constant dense<0.000000e+00> : vector<64x4xf32>
    %52 = tpu.matmul %49, %51, %cst_63 {dimension_numbers = #tpu.dot_dimension_numbers<[1], [0], [0], [1], [0, 0, 1, 1], [], []>} : vector<64x4xf32>, vector<4x4xf32>, vector<64x4xf32> -> vector<64x4xf32>
    %53 = arith.addf %47, %52 : vector<64x4xf32>
    %c2_64 = arith.constant 2 : index
    %c1_65 = arith.constant 1 : index
    %c0_66 = arith.constant 0 : index
    %54 = tpu.strided_load %arg5[%c2_64, %c1_65, %c0_66] {strides = array<i32: 2, 2, 1>} : memref<18x18x4xf32, #tpu.memory_space<vmem>>, vector<8x8x4xf32>
    %55 = vector.shape_cast %54 : vector<8x8x4xf32> to vector<64x4xf32>
    %c7 = arith.constant 7 : index
    %c0_67 = arith.constant 0 : index
    %c0_68 = arith.constant 0 : index
    %56 = vector.load %arg2[%c7, %c0_67, %c0_68] : memref<9x4x4xf32, #tpu.memory_space<vmem>>, vector<1x4x4xf32>
    %57 = vector.shape_cast %56 : vector<1x4x4xf32> to vector<4x4xf32>
    %cst_69 = arith.constant dense<0.000000e+00> : vector<64x4xf32>
    %58 = tpu.matmul %55, %57, %cst_69 {dimension_numbers = #tpu.dot_dimension_numbers<[1], [0], [0], [1], [0, 0, 1, 1], [], []>} : vector<64x4xf32>, vector<4x4xf32>, vector<64x4xf32> -> vector<64x4xf32>
    %59 = arith.addf %53, %58 : vector<64x4xf32>
    %c2_70 = arith.constant 2 : index
    %c2_71 = arith.constant 2 : index
    %c0_72 = arith.constant 0 : index
    %60 = tpu.strided_load %arg5[%c2_70, %c2_71, %c0_72] {strides = array<i32: 2, 2, 1>} : memref<18x18x4xf32, #tpu.memory_space<vmem>>, vector<8x8x4xf32>
    %61 = vector.shape_cast %60 : vector<8x8x4xf32> to vector<64x4xf32>
    %c8 = arith.constant 8 : index
    %c0_73 = arith.constant 0 : index
    %c0_74 = arith.constant 0 : index
    %62 = vector.load %arg2[%c8, %c0_73, %c0_74] : memref<9x4x4xf32, #tpu.memory_space<vmem>>, vector<1x4x4xf32>
    %63 = vector.shape_cast %62 : vector<1x4x4xf32> to vector<4x4xf32>
    %cst_75 = arith.constant dense<0.000000e+00> : vector<64x4xf32>
    %64 = tpu.matmul %61, %63, %cst_75 {dimension_numbers = #tpu.dot_dimension_numbers<[1], [0], [0], [1], [0, 0, 1, 1], [], []>} : vector<64x4xf32>, vector<4x4xf32>, vector<64x4xf32> -> vector<64x4xf32>
    %65 = arith.addf %59, %64 : vector<64x4xf32>
    %cst_76 = arith.constant dense<0.000000e+00> : vector<4xf32>
    %66 = vector.multi_reduction <add>, %65, %cst_76 [0] : vector<64x4xf32> to vector<4xf32>
    %67 = vector.shape_cast %66 : vector<4xf32> to vector<1x4xf32>
    %c0_77 = arith.constant 0 : index
    %c0_78 = arith.constant 0 : index
    %c0_79 = arith.constant 0 : index
    %68 = vector.load %arg4[%c0_77, %c0_78, %c0_79] : memref<1x2x4xf32, #tpu.memory_space<vmem>>, vector<1x1x4xf32>
    %69 = vector.shape_cast %68 : vector<1x1x4xf32> to vector<1x4xf32>
    %70 = vector.shape_cast %67 : vector<1x4xf32> to vector<1x1x4xf32>
    tpu.vector_store %arg4[%c0_77, %c0_78, %c0_79], %70 {strides = array<i32>} : memref<1x2x4xf32, #tpu.memory_space<vmem>>, vector<1x1x4xf32>,
    %71 = arith.mulf %65, %65 : vector<64x4xf32>
    %cst_80 = arith.constant dense<0.000000e+00> : vector<4xf32>
    %72 = vector.multi_reduction <add>, %71, %cst_80 [0] : vector<64x4xf32> to vector<4xf32>
    %73 = vector.shape_cast %72 : vector<4xf32> to vector<1x4xf32>
    %c0_81 = arith.constant 0 : index
    %c1_82 = arith.constant 1 : index
    %c0_83 = arith.constant 0 : index
    %74 = vector.load %arg4[%c0_81, %c1_82, %c0_83] : memref<1x2x4xf32, #tpu.memory_space<vmem>>, vector<1x1x4xf32>
    %75 = vector.shape_cast %74 : vector<1x1x4xf32> to vector<1x4xf32>
    %76 = vector.shape_cast %73 : vector<1x4xf32> to vector<1x1x4xf32>
    tpu.vector_store %arg4[%c0_81, %c1_82, %c0_83], %76 {strides = array<i32>} : memref<1x2x4xf32, #tpu.memory_space<vmem>>, vector<1x1x4xf32>,
    %c0_84 = arith.constant 0 : index
    %c0_85 = arith.constant 0 : index
    %c0_86 = arith.constant 0 : index
    %77 = vector.load %arg3[%c0_84, %c0_85, %c0_86] : memref<1x64x4xf32, #tpu.memory_space<vmem>>, vector<1x64x4xf32>
    %78 = vector.shape_cast %77 : vector<1x64x4xf32> to vector<64x4xf32>
    %79 = vector.shape_cast %65 : vector<64x4xf32> to vector<1x64x4xf32>
    tpu.vector_store %arg3[%c0_84, %c0_85, %c0_86], %79 {strides = array<i32>} : memref<1x64x4xf32, #tpu.memory_space<vmem>>, vector<1x64x4xf32>,
    return
  }
  func.func @transform_0(%arg0: i32) -> (i32, i32, i32, i32) {
    %c0_i32 = arith.constant 0 : i32
    %c0_i32_0 = arith.constant 0 : i32
    %c0_i32_1 = arith.constant 0 : i32
    %c0_i32_2 = arith.constant 0 : i32
    return %arg0, %c0_i32, %c0_i32_0, %c0_i32_1 : i32, i32, i32, i32
  }
  func.func @transform_1(%arg0: i32) -> (i32, i32, i32) {
    %c0_i32 = arith.constant 0 : i32
    %c0_i32_0 = arith.constant 0 : i32
    %c0_i32_1 = arith.constant 0 : i32
    %c0_i32_2 = arith.constant 0 : i32
    return %c0_i32, %c0_i32_0, %c0_i32_1 : i32, i32, i32
  }
  func.func @transform_2(%arg0: i32) -> (i32, i32, i32) {
    %c0_i32 = arith.constant 0 : i32
    %c0_i32_0 = arith.constant 0 : i32
    %c0_i32_1 = arith.constant 0 : i32
    return %arg0, %c0_i32, %c0_i32_0 : i32, i32, i32
  }
  func.func @transform_3(%arg0: i32) -> (i32, i32, i32) {
    %c0_i32 = arith.constant 0 : i32
    %c0_i32_0 = arith.constant 0 : i32
    %c0_i32_1 = arith.constant 0 : i32
    return %arg0, %c0_i32, %c0_i32_0 : i32, i32, i32
  }
}

module attributes {stable_mosaic.version = 11 : i64} {
  func.func @_final_bn_relu_kernel(%arg0: i32, %arg1: i32, %arg2: memref<1x8x64xf32, #tpu.memory_space<vmem>>, %arg3: memref<8x1xf32, #tpu.memory_space<vmem>>, %arg4: memref<8x1xf32, #tpu.memory_space<vmem>>, %arg5: memref<1x8x64xf32, #tpu.memory_space<vmem>>) attributes {dimension_semantics = [#tpu.dimension_semantics<parallel>, #tpu.dimension_semantics<parallel>], iteration_bounds = array<i64: 2, 1>, scalar_prefetch = 0 : i64, scratch_operands = 0 : i64, tpu.core_type = #tpu.core_type<tc>, window_params = [{transform_indices = @transform_0, window_bounds = array<i64: 1, 8, 64>}, {pipeline_mode = #tpu.pipeline_mode<synchronous>, transform_indices = @transform_1, window_bounds = array<i64: 8, 1>}, {pipeline_mode = #tpu.pipeline_mode<synchronous>, transform_indices = @transform_2, window_bounds = array<i64: 8, 1>}, {transform_indices = @transform_3, window_bounds = array<i64: 1, 8, 64>}]} {
    %c0 = arith.constant 0 : index
    %c0_0 = arith.constant 0 : index
    %c0_1 = arith.constant 0 : index
    %0 = vector.load %arg2[%c0, %c0_0, %c0_1] : memref<1x8x64xf32, #tpu.memory_space<vmem>>, vector<1x8x64xf32>
    %c0_2 = arith.constant 0 : index
    %c0_3 = arith.constant 0 : index
    %1 = vector.load %arg3[%c0_2, %c0_3] : memref<8x1xf32, #tpu.memory_space<vmem>>, vector<8x1xf32>
    %2 = vector.shape_cast %1 : vector<8x1xf32> to vector<1x8x1xf32>
    %3 = vector.broadcast %2 : vector<1x8x1xf32> to vector<1x8x64xf32>
    %4 = arith.mulf %0, %3 : vector<1x8x64xf32>
    %c0_4 = arith.constant 0 : index
    %c0_5 = arith.constant 0 : index
    %5 = vector.load %arg4[%c0_4, %c0_5] : memref<8x1xf32, #tpu.memory_space<vmem>>, vector<8x1xf32>
    %6 = vector.shape_cast %5 : vector<8x1xf32> to vector<1x8x1xf32>
    %7 = vector.broadcast %6 : vector<1x8x1xf32> to vector<1x8x64xf32>
    %8 = arith.addf %4, %7 : vector<1x8x64xf32>
    %cst = arith.constant 0.000000e+00 : f32
    %9 = vector.broadcast %cst : f32 to vector<1x8x64xf32>
    %10 = arith.maximumf %8, %9 : vector<1x8x64xf32>
    %c0_6 = arith.constant 0 : index
    %c0_7 = arith.constant 0 : index
    %c0_8 = arith.constant 0 : index
    %11 = vector.load %arg5[%c0_6, %c0_7, %c0_8] : memref<1x8x64xf32, #tpu.memory_space<vmem>>, vector<1x8x64xf32>
    tpu.vector_store %arg5[%c0_6, %c0_7, %c0_8], %10 {strides = array<i32>} : memref<1x8x64xf32, #tpu.memory_space<vmem>>, vector<1x8x64xf32>,
    return
  }
  func.func @transform_0(%arg0: i32, %arg1: i32) -> (i32, i32, i32) {
    %c0_i32 = arith.constant 0 : i32
    %c0_i32_0 = arith.constant 0 : i32
    return %arg0, %c0_i32, %arg1 : i32, i32, i32
  }
  func.func @transform_1(%arg0: i32, %arg1: i32) -> (i32, i32) {
    %c0_i32 = arith.constant 0 : i32
    %c0_i32_0 = arith.constant 0 : i32
    %c0_i32_1 = arith.constant 0 : i32
    return %c0_i32, %c0_i32_0 : i32, i32
  }
  func.func @transform_2(%arg0: i32, %arg1: i32) -> (i32, i32) {
    %c0_i32 = arith.constant 0 : i32
    %c0_i32_0 = arith.constant 0 : i32
    %c0_i32_1 = arith.constant 0 : i32
    return %c0_i32, %c0_i32_0 : i32, i32
  }
  func.func @transform_3(%arg0: i32, %arg1: i32) -> (i32, i32, i32) {
    %c0_i32 = arith.constant 0 : i32
    %c0_i32_0 = arith.constant 0 : i32
    return %arg0, %c0_i32, %arg1 : i32, i32, i32
  }
}

module attributes {stable_mosaic.version = 11 : i64} {
  func.func @_fused_block_kernel(%arg0: i32, %arg1: memref<1x8x8x4xf32, #tpu.memory_space<vmem>>, %arg2: memref<9x4x8xf32, #tpu.memory_space<vmem>>, %arg3: memref<1x4xf32, #tpu.memory_space<vmem>>, %arg4: memref<1x4xf32, #tpu.memory_space<vmem>>, %arg5: memref<1x8x64xf32, #tpu.memory_space<vmem>>, %arg6: memref<1x2x8xf32, #tpu.memory_space<vmem>>, %arg7: memref<10x10x4xf32, #tpu.memory_space<vmem>>) attributes {dimension_semantics = [#tpu.dimension_semantics<parallel>], iteration_bounds = array<i64: 2>, scalar_prefetch = 0 : i64, scratch_operands = 1 : i64, tpu.core_type = #tpu.core_type<tc>, window_params = [{transform_indices = @transform_0, window_bounds = array<i64: 1, 8, 8, 4>}, {pipeline_mode = #tpu.pipeline_mode<synchronous>, transform_indices = @transform_1, window_bounds = array<i64: 9, 4, 8>}, {pipeline_mode = #tpu.pipeline_mode<synchronous>, transform_indices = @transform_2, window_bounds = array<i64: 1, 4>}, {pipeline_mode = #tpu.pipeline_mode<synchronous>, transform_indices = @transform_3, window_bounds = array<i64: 1, 4>}, {transform_indices = @transform_4, window_bounds = array<i64: 1, 8, 64>}, {transform_indices = @transform_5, window_bounds = array<i64: 1, 2, 8>}]} {
    %c0 = arith.constant 0 : index
    %c0_0 = arith.constant 0 : index
    %c0_1 = arith.constant 0 : index
    %c0_2 = arith.constant 0 : index
    %0 = vector.load %arg1[%c0, %c0_0, %c0_1, %c0_2] : memref<1x8x8x4xf32, #tpu.memory_space<vmem>>, vector<1x8x8x4xf32>
    %1 = vector.shape_cast %0 : vector<1x8x8x4xf32> to vector<8x8x4xf32>
    %c0_3 = arith.constant 0 : index
    %c0_4 = arith.constant 0 : index
    %2 = vector.load %arg3[%c0_3, %c0_4] : memref<1x4xf32, #tpu.memory_space<vmem>>, vector<1x4xf32>
    %3 = vector.shape_cast %2 : vector<1x4xf32> to vector<1x1x4xf32>
    %4 = vector.broadcast %3 : vector<1x1x4xf32> to vector<8x8x4xf32>
    %5 = arith.mulf %1, %4 : vector<8x8x4xf32>
    %c0_5 = arith.constant 0 : index
    %c0_6 = arith.constant 0 : index
    %6 = vector.load %arg4[%c0_5, %c0_6] : memref<1x4xf32, #tpu.memory_space<vmem>>, vector<1x4xf32>
    %7 = vector.shape_cast %6 : vector<1x4xf32> to vector<1x1x4xf32>
    %8 = vector.broadcast %7 : vector<1x1x4xf32> to vector<8x8x4xf32>
    %9 = arith.addf %5, %8 : vector<8x8x4xf32>
    %cst = arith.constant 0.000000e+00 : f32
    %10 = vector.broadcast %cst : f32 to vector<8x8x4xf32>
    %11 = arith.maximumf %9, %10 : vector<8x8x4xf32>
    %cst_7 = arith.constant 0.000000e+00 : f32
    %12 = vector.broadcast %cst_7 : f32 to vector<1x10x4xf32>
    %c0_8 = arith.constant 0 : index
    %c0_9 = arith.constant 0 : index
    %c0_10 = arith.constant 0 : index
    %13 = vector.load %arg7[%c0_8, %c0_9, %c0_10] : memref<10x10x4xf32, #tpu.memory_space<vmem>>, vector<1x10x4xf32>
    tpu.vector_store %arg7[%c0_8, %c0_9, %c0_10], %12 {strides = array<i32>} : memref<10x10x4xf32, #tpu.memory_space<vmem>>, vector<1x10x4xf32>,
    %cst_11 = arith.constant 0.000000e+00 : f32
    %14 = vector.broadcast %cst_11 : f32 to vector<1x10x4xf32>
    %c9 = arith.constant 9 : index
    %c0_12 = arith.constant 0 : index
    %c0_13 = arith.constant 0 : index
    %15 = vector.load %arg7[%c9, %c0_12, %c0_13] : memref<10x10x4xf32, #tpu.memory_space<vmem>>, vector<1x10x4xf32>
    tpu.vector_store %arg7[%c9, %c0_12, %c0_13], %14 {strides = array<i32>} : memref<10x10x4xf32, #tpu.memory_space<vmem>>, vector<1x10x4xf32>,
    %cst_14 = arith.constant 0.000000e+00 : f32
    %16 = vector.broadcast %cst_14 : f32 to vector<10x1x4xf32>
    %c0_15 = arith.constant 0 : index
    %c0_16 = arith.constant 0 : index
    %c0_17 = arith.constant 0 : index
    %17 = vector.load %arg7[%c0_15, %c0_16, %c0_17] : memref<10x10x4xf32, #tpu.memory_space<vmem>>, vector<10x1x4xf32>
    tpu.vector_store %arg7[%c0_15, %c0_16, %c0_17], %16 {strides = array<i32>} : memref<10x10x4xf32, #tpu.memory_space<vmem>>, vector<10x1x4xf32>,
    %cst_18 = arith.constant 0.000000e+00 : f32
    %18 = vector.broadcast %cst_18 : f32 to vector<10x1x4xf32>
    %c0_19 = arith.constant 0 : index
    %c9_20 = arith.constant 9 : index
    %c0_21 = arith.constant 0 : index
    %19 = vector.load %arg7[%c0_19, %c9_20, %c0_21] : memref<10x10x4xf32, #tpu.memory_space<vmem>>, vector<10x1x4xf32>
    tpu.vector_store %arg7[%c0_19, %c9_20, %c0_21], %18 {strides = array<i32>} : memref<10x10x4xf32, #tpu.memory_space<vmem>>, vector<10x1x4xf32>,
    %c1 = arith.constant 1 : index
    %c1_22 = arith.constant 1 : index
    %c0_23 = arith.constant 0 : index
    %20 = vector.load %arg7[%c1, %c1_22, %c0_23] : memref<10x10x4xf32, #tpu.memory_space<vmem>>, vector<8x8x4xf32>
    tpu.vector_store %arg7[%c1, %c1_22, %c0_23], %11 {strides = array<i32>} : memref<10x10x4xf32, #tpu.memory_space<vmem>>, vector<8x8x4xf32>,
    %cst_24 = arith.constant 0.000000e+00 : f32
    %21 = vector.broadcast %cst_24 : f32 to vector<64x8xf32>
    %c0_25 = arith.constant 0 : index
    %c0_26 = arith.constant 0 : index
    %c0_27 = arith.constant 0 : index
    %22 = vector.load %arg7[%c0_25, %c0_26, %c0_27] : memref<10x10x4xf32, #tpu.memory_space<vmem>>, vector<8x8x4xf32>
    %23 = vector.shape_cast %22 : vector<8x8x4xf32> to vector<64x4xf32>
    %c0_28 = arith.constant 0 : index
    %c0_29 = arith.constant 0 : index
    %c0_30 = arith.constant 0 : index
    %24 = vector.load %arg2[%c0_28, %c0_29, %c0_30] : memref<9x4x8xf32, #tpu.memory_space<vmem>>, vector<1x4x8xf32>
    %25 = vector.shape_cast %24 : vector<1x4x8xf32> to vector<4x8xf32>
    %cst_31 = arith.constant dense<0.000000e+00> : vector<64x8xf32>
    %26 = tpu.matmul %23, %25, %cst_31 {dimension_numbers = #tpu.dot_dimension_numbers<[1], [0], [0], [1], [0, 0, 1, 1], [], []>} : vector<64x4xf32>, vector<4x8xf32>, vector<64x8xf32> -> vector<64x8xf32>
    %27 = arith.addf %21, %26 : vector<64x8xf32>
    %c0_32 = arith.constant 0 : index
    %c1_33 = arith.constant 1 : index
    %c0_34 = arith.constant 0 : index
    %28 = vector.load %arg7[%c0_32, %c1_33, %c0_34] : memref<10x10x4xf32, #tpu.memory_space<vmem>>, vector<8x8x4xf32>
    %29 = vector.shape_cast %28 : vector<8x8x4xf32> to vector<64x4xf32>
    %c1_35 = arith.constant 1 : index
    %c0_36 = arith.constant 0 : index
    %c0_37 = arith.constant 0 : index
    %30 = vector.load %arg2[%c1_35, %c0_36, %c0_37] : memref<9x4x8xf32, #tpu.memory_space<vmem>>, vector<1x4x8xf32>
    %31 = vector.shape_cast %30 : vector<1x4x8xf32> to vector<4x8xf32>
    %cst_38 = arith.constant dense<0.000000e+00> : vector<64x8xf32>
    %32 = tpu.matmul %29, %31, %cst_38 {dimension_numbers = #tpu.dot_dimension_numbers<[1], [0], [0], [1], [0, 0, 1, 1], [], []>} : vector<64x4xf32>, vector<4x8xf32>, vector<64x8xf32> -> vector<64x8xf32>
    %33 = arith.addf %27, %32 : vector<64x8xf32>
    %c0_39 = arith.constant 0 : index
    %c2 = arith.constant 2 : index
    %c0_40 = arith.constant 0 : index
    %34 = vector.load %arg7[%c0_39, %c2, %c0_40] : memref<10x10x4xf32, #tpu.memory_space<vmem>>, vector<8x8x4xf32>
    %35 = vector.shape_cast %34 : vector<8x8x4xf32> to vector<64x4xf32>
    %c2_41 = arith.constant 2 : index
    %c0_42 = arith.constant 0 : index
    %c0_43 = arith.constant 0 : index
    %36 = vector.load %arg2[%c2_41, %c0_42, %c0_43] : memref<9x4x8xf32, #tpu.memory_space<vmem>>, vector<1x4x8xf32>
    %37 = vector.shape_cast %36 : vector<1x4x8xf32> to vector<4x8xf32>
    %cst_44 = arith.constant dense<0.000000e+00> : vector<64x8xf32>
    %38 = tpu.matmul %35, %37, %cst_44 {dimension_numbers = #tpu.dot_dimension_numbers<[1], [0], [0], [1], [0, 0, 1, 1], [], []>} : vector<64x4xf32>, vector<4x8xf32>, vector<64x8xf32> -> vector<64x8xf32>
    %39 = arith.addf %33, %38 : vector<64x8xf32>
    %c1_45 = arith.constant 1 : index
    %c0_46 = arith.constant 0 : index
    %c0_47 = arith.constant 0 : index
    %40 = vector.load %arg7[%c1_45, %c0_46, %c0_47] : memref<10x10x4xf32, #tpu.memory_space<vmem>>, vector<8x8x4xf32>
    %41 = vector.shape_cast %40 : vector<8x8x4xf32> to vector<64x4xf32>
    %c3 = arith.constant 3 : index
    %c0_48 = arith.constant 0 : index
    %c0_49 = arith.constant 0 : index
    %42 = vector.load %arg2[%c3, %c0_48, %c0_49] : memref<9x4x8xf32, #tpu.memory_space<vmem>>, vector<1x4x8xf32>
    %43 = vector.shape_cast %42 : vector<1x4x8xf32> to vector<4x8xf32>
    %cst_50 = arith.constant dense<0.000000e+00> : vector<64x8xf32>
    %44 = tpu.matmul %41, %43, %cst_50 {dimension_numbers = #tpu.dot_dimension_numbers<[1], [0], [0], [1], [0, 0, 1, 1], [], []>} : vector<64x4xf32>, vector<4x8xf32>, vector<64x8xf32> -> vector<64x8xf32>
    %45 = arith.addf %39, %44 : vector<64x8xf32>
    %c1_51 = arith.constant 1 : index
    %c1_52 = arith.constant 1 : index
    %c0_53 = arith.constant 0 : index
    %46 = vector.load %arg7[%c1_51, %c1_52, %c0_53] : memref<10x10x4xf32, #tpu.memory_space<vmem>>, vector<8x8x4xf32>
    %47 = vector.shape_cast %46 : vector<8x8x4xf32> to vector<64x4xf32>
    %c4 = arith.constant 4 : index
    %c0_54 = arith.constant 0 : index
    %c0_55 = arith.constant 0 : index
    %48 = vector.load %arg2[%c4, %c0_54, %c0_55] : memref<9x4x8xf32, #tpu.memory_space<vmem>>, vector<1x4x8xf32>
    %49 = vector.shape_cast %48 : vector<1x4x8xf32> to vector<4x8xf32>
    %cst_56 = arith.constant dense<0.000000e+00> : vector<64x8xf32>
    %50 = tpu.matmul %47, %49, %cst_56 {dimension_numbers = #tpu.dot_dimension_numbers<[1], [0], [0], [1], [0, 0, 1, 1], [], []>} : vector<64x4xf32>, vector<4x8xf32>, vector<64x8xf32> -> vector<64x8xf32>
    %51 = arith.addf %45, %50 : vector<64x8xf32>
    %c1_57 = arith.constant 1 : index
    %c2_58 = arith.constant 2 : index
    %c0_59 = arith.constant 0 : index
    %52 = vector.load %arg7[%c1_57, %c2_58, %c0_59] : memref<10x10x4xf32, #tpu.memory_space<vmem>>, vector<8x8x4xf32>
    %53 = vector.shape_cast %52 : vector<8x8x4xf32> to vector<64x4xf32>
    %c5 = arith.constant 5 : index
    %c0_60 = arith.constant 0 : index
    %c0_61 = arith.constant 0 : index
    %54 = vector.load %arg2[%c5, %c0_60, %c0_61] : memref<9x4x8xf32, #tpu.memory_space<vmem>>, vector<1x4x8xf32>
    %55 = vector.shape_cast %54 : vector<1x4x8xf32> to vector<4x8xf32>
    %cst_62 = arith.constant dense<0.000000e+00> : vector<64x8xf32>
    %56 = tpu.matmul %53, %55, %cst_62 {dimension_numbers = #tpu.dot_dimension_numbers<[1], [0], [0], [1], [0, 0, 1, 1], [], []>} : vector<64x4xf32>, vector<4x8xf32>, vector<64x8xf32> -> vector<64x8xf32>
    %57 = arith.addf %51, %56 : vector<64x8xf32>
    %c2_63 = arith.constant 2 : index
    %c0_64 = arith.constant 0 : index
    %c0_65 = arith.constant 0 : index
    %58 = vector.load %arg7[%c2_63, %c0_64, %c0_65] : memref<10x10x4xf32, #tpu.memory_space<vmem>>, vector<8x8x4xf32>
    %59 = vector.shape_cast %58 : vector<8x8x4xf32> to vector<64x4xf32>
    %c6 = arith.constant 6 : index
    %c0_66 = arith.constant 0 : index
    %c0_67 = arith.constant 0 : index
    %60 = vector.load %arg2[%c6, %c0_66, %c0_67] : memref<9x4x8xf32, #tpu.memory_space<vmem>>, vector<1x4x8xf32>
    %61 = vector.shape_cast %60 : vector<1x4x8xf32> to vector<4x8xf32>
    %cst_68 = arith.constant dense<0.000000e+00> : vector<64x8xf32>
    %62 = tpu.matmul %59, %61, %cst_68 {dimension_numbers = #tpu.dot_dimension_numbers<[1], [0], [0], [1], [0, 0, 1, 1], [], []>} : vector<64x4xf32>, vector<4x8xf32>, vector<64x8xf32> -> vector<64x8xf32>
    %63 = arith.addf %57, %62 : vector<64x8xf32>
    %c2_69 = arith.constant 2 : index
    %c1_70 = arith.constant 1 : index
    %c0_71 = arith.constant 0 : index
    %64 = vector.load %arg7[%c2_69, %c1_70, %c0_71] : memref<10x10x4xf32, #tpu.memory_space<vmem>>, vector<8x8x4xf32>
    %65 = vector.shape_cast %64 : vector<8x8x4xf32> to vector<64x4xf32>
    %c7 = arith.constant 7 : index
    %c0_72 = arith.constant 0 : index
    %c0_73 = arith.constant 0 : index
    %66 = vector.load %arg2[%c7, %c0_72, %c0_73] : memref<9x4x8xf32, #tpu.memory_space<vmem>>, vector<1x4x8xf32>
    %67 = vector.shape_cast %66 : vector<1x4x8xf32> to vector<4x8xf32>
    %cst_74 = arith.constant dense<0.000000e+00> : vector<64x8xf32>
    %68 = tpu.matmul %65, %67, %cst_74 {dimension_numbers = #tpu.dot_dimension_numbers<[1], [0], [0], [1], [0, 0, 1, 1], [], []>} : vector<64x4xf32>, vector<4x8xf32>, vector<64x8xf32> -> vector<64x8xf32>
    %69 = arith.addf %63, %68 : vector<64x8xf32>
    %c2_75 = arith.constant 2 : index
    %c2_76 = arith.constant 2 : index
    %c0_77 = arith.constant 0 : index
    %70 = vector.load %arg7[%c2_75, %c2_76, %c0_77] : memref<10x10x4xf32, #tpu.memory_space<vmem>>, vector<8x8x4xf32>
    %71 = vector.shape_cast %70 : vector<8x8x4xf32> to vector<64x4xf32>
    %c8 = arith.constant 8 : index
    %c0_78 = arith.constant 0 : index
    %c0_79 = arith.constant 0 : index
    %72 = vector.load %arg2[%c8, %c0_78, %c0_79] : memref<9x4x8xf32, #tpu.memory_space<vmem>>, vector<1x4x8xf32>
    %73 = vector.shape_cast %72 : vector<1x4x8xf32> to vector<4x8xf32>
    %cst_80 = arith.constant dense<0.000000e+00> : vector<64x8xf32>
    %74 = tpu.matmul %71, %73, %cst_80 {dimension_numbers = #tpu.dot_dimension_numbers<[1], [0], [0], [1], [0, 0, 1, 1], [], []>} : vector<64x4xf32>, vector<4x8xf32>, vector<64x8xf32> -> vector<64x8xf32>
    %75 = arith.addf %69, %74 : vector<64x8xf32>
    %cst_81 = arith.constant dense<0.000000e+00> : vector<8xf32>
    %76 = vector.multi_reduction <add>, %75, %cst_81 [0] : vector<64x8xf32> to vector<8xf32>
    %77 = vector.shape_cast %76 : vector<8xf32> to vector<1x8xf32>
    %c0_82 = arith.constant 0 : index
    %c0_83 = arith.constant 0 : index
    %c0_84 = arith.constant 0 : index
    %78 = vector.load %arg6[%c0_82, %c0_83, %c0_84] : memref<1x2x8xf32, #tpu.memory_space<vmem>>, vector<1x1x8xf32>
    %79 = vector.shape_cast %78 : vector<1x1x8xf32> to vector<1x8xf32>
    %80 = vector.shape_cast %77 : vector<1x8xf32> to vector<1x1x8xf32>
    tpu.vector_store %arg6[%c0_82, %c0_83, %c0_84], %80 {strides = array<i32>} : memref<1x2x8xf32, #tpu.memory_space<vmem>>, vector<1x1x8xf32>,
    %81 = arith.mulf %75, %75 : vector<64x8xf32>
    %cst_85 = arith.constant dense<0.000000e+00> : vector<8xf32>
    %82 = vector.multi_reduction <add>, %81, %cst_85 [0] : vector<64x8xf32> to vector<8xf32>
    %83 = vector.shape_cast %82 : vector<8xf32> to vector<1x8xf32>
    %c0_86 = arith.constant 0 : index
    %c1_87 = arith.constant 1 : index
    %c0_88 = arith.constant 0 : index
    %84 = vector.load %arg6[%c0_86, %c1_87, %c0_88] : memref<1x2x8xf32, #tpu.memory_space<vmem>>, vector<1x1x8xf32>
    %85 = vector.shape_cast %84 : vector<1x1x8xf32> to vector<1x8xf32>
    %86 = vector.shape_cast %83 : vector<1x8xf32> to vector<1x1x8xf32>
    tpu.vector_store %arg6[%c0_86, %c1_87, %c0_88], %86 {strides = array<i32>} : memref<1x2x8xf32, #tpu.memory_space<vmem>>, vector<1x1x8xf32>,
    %87 = tpu.transpose %75, [1, 0] : vector<64x8xf32> -> vector<8x64xf32>
    %c0_89 = arith.constant 0 : index
    %c0_90 = arith.constant 0 : index
    %c0_91 = arith.constant 0 : index
    %88 = vector.load %arg5[%c0_89, %c0_90, %c0_91] : memref<1x8x64xf32, #tpu.memory_space<vmem>>, vector<1x8x64xf32>
    %89 = vector.shape_cast %88 : vector<1x8x64xf32> to vector<8x64xf32>
    %90 = vector.shape_cast %87 : vector<8x64xf32> to vector<1x8x64xf32>
    tpu.vector_store %arg5[%c0_89, %c0_90, %c0_91], %90 {strides = array<i32>} : memref<1x8x64xf32, #tpu.memory_space<vmem>>, vector<1x8x64xf32>,
    return
  }
  func.func @transform_0(%arg0: i32) -> (i32, i32, i32, i32) {
    %c0_i32 = arith.constant 0 : i32
    %c0_i32_0 = arith.constant 0 : i32
    %c0_i32_1 = arith.constant 0 : i32
    %c0_i32_2 = arith.constant 0 : i32
    return %arg0, %c0_i32, %c0_i32_0, %c0_i32_1 : i32, i32, i32, i32
  }
  func.func @transform_1(%arg0: i32) -> (i32, i32, i32) {
    %c0_i32 = arith.constant 0 : i32
    %c0_i32_0 = arith.constant 0 : i32
    %c0_i32_1 = arith.constant 0 : i32
    %c0_i32_2 = arith.constant 0 : i32
    return %c0_i32, %c0_i32_0, %c0_i32_1 : i32, i32, i32
  }
  func.func @transform_2(%arg0: i32) -> (i32, i32) {
    %c0_i32 = arith.constant 0 : i32
    %c0_i32_0 = arith.constant 0 : i32
    %c0_i32_1 = arith.constant 0 : i32
    return %c0_i32, %c0_i32_0 : i32, i32
  }
  func.func @transform_3(%arg0: i32) -> (i32, i32) {
    %c0_i32 = arith.constant 0 : i32
    %c0_i32_0 = arith.constant 0 : i32
    %c0_i32_1 = arith.constant 0 : i32
    return %c0_i32, %c0_i32_0 : i32, i32
  }
  func.func @transform_4(%arg0: i32) -> (i32, i32, i32) {
    %c0_i32 = arith.constant 0 : i32
    %c0_i32_0 = arith.constant 0 : i32
    %c0_i32_1 = arith.constant 0 : i32
    return %arg0, %c0_i32, %c0_i32_0 : i32, i32, i32
  }
  func.func @transform_5(%arg0: i32) -> (i32, i32, i32) {
    %c0_i32 = arith.constant 0 : i32
    %c0_i32_0 = arith.constant 0 : i32
    %c0_i32_1 = arith.constant 0 : i32
    return %arg0, %c0_i32, %c0_i32_0 : i32, i32, i32
  }
}

</mosaic_0001>

<bundles_post_ra>
// kernel: _lambda_.5
= control target key start
LH: loop header
LB: loop body
LE: loop exit
PB: predicated region body
PF: predicated region fallthrough
CT: control target
= control target key end

     0   :  { %s369_s12 = smov 0   ;;  %s371_s13 = smov 0   ;;  %s405_s0 = inlined_call_operand.vmem [shape: f32[2,8,64], index: 0, kind: input, shape index: {}]   ;;  %s406_s1 = inlined_call_operand.vmem [shape: f32[8,1], index: 1, kind: input, shape index: {}]   ;;  %s407_s2 = inlined_call_operand.vmem [shape: f32[8,1], index: 2, kind: input, shape index: {}]   ;;  %s408_s3 = inlined_call_operand.vmem [shape: f32[2,8,64], index: 3, kind: output, shape index: {}]  }
   0x1   :  { %s373_s14 = smov 0  }
   0x2 LB: > { %s25_s15 = sadd.s32 1, %s342_s13  ;;  %p293_p0 = scmp.ge.s32.totalorder %s346_s14, 1  ;;  %s346_s14 = sphi %s373_s14, %s13_s14   ;;  %s342_s13 = sphi %s371_s13, %s410_s13   ;;  %s338_s12 = sphi %s369_s12, %s409_s12  }
   0x3   : > { %p27_p1 = scmp.ge.s32.totalorder %s25_s15, 2  ;;  %p155_p2 = scmp.lt.s32.totalorder %s346_s14, 3 }
   0x5   : > { %s412_s15 = smov (%p27_p1, %s25_s15), 0  ;;  %p156_p3 = pnand %p293_p0, %p155_p2 }
   0x6   : > { %p183_p4 = scmp.lt.s32.totalorder (!%p156_p3), %s338_s12, 1 }
   0x7   : > { %159 = sbr.rel (%p156_p3) target bundleno = 142 (0x8e), region = 32 }
   0xc   : > { %v198_v0 = vld [vmem:[%s406_s1] sm:$0xff]  ;;  %v348_v1 = vmov 0   ;;  %s414_s12 = smov (!%p183_p4, %s338_s12), 1  ;;  %vm213_vm0 = vcmask 523264  }
   0xd   : > { %323 = vset.pattern.permute.xlu0 %v348_v1  ;;  %v205_v2 = vld [vmem:[%s407_s2] sm:$0xff]  ;;  %s294_s20 = sshll.u32 %s414_s12, 3 }
   0xe   : > { %201 = vperm.xlu0 %323, %v198_v0   ;;  %s189_s23 = scalar_lea.vmem %s405_s0, %s294_s20  ;;  %s196_s26 = scalar_lea.vmem %s408_s3, %s294_s20 }
   0xf   : > { %v197_v4 = vld [vmem:[%s189_s23] sm:$0xff] }
  0x16   : > { %208 = vperm.xlu0 %323, %v205_v2  }
  0x80   : > { %v202_v3 = vpop.permute.xlu0 %201 }
  0x81   : > { %v204_v5 = vmul.f32 %v202_v3, %v197_v4 }
  0x88   : > { %v209_v6 = vpop.permute.xlu0 %208 }
  0x89   : > { %v211_v7 = vadd.f32 %v209_v6, %v204_v5 }
  0x8b   : > { %v212_v8 = vmax.f32 %v211_v7, 0.0 }
  0x8d   : > { %214 = vst.msk [vmem:[%s196_s26] sm:$0xff] %vm213_vm0, %v212_v8 }
  0x8e PF: > { %s13_s14 = sadd.s32 1, %s346_s14   ;;  %s409_s12 = smov %s342_s13 }
  0x8f   : > { %p10_p5 = scmp.ge.s32.totalorder %s13_s14, 4   ;;  %s410_s13 = smov %s412_s15 }
  0x91   :  { %12 = sbr.rel (!%p10_p5) target bundleno = 2 (0x2), region = 62 }

// kernel: _lambda_.3
= control target key start
LH: loop header
LB: loop body
LE: loop exit
PB: predicated region body
PF: predicated region fallthrough
CT: control target
= control target key end

     0   :  { %s1457_s12 = smov 0   ;;  %s1803_s0 = inlined_call_operand.vmem [shape: f32[2,16,16,4], index: 0, kind: input, shape index: {}]   ;;  %s1804_s1 = inlined_call_operand.vmem [shape: f32[9,4,4], index: 1, kind: input, shape index: {}]   ;;  %s1805_s2 = inlined_call_operand.vmem [shape: f32[2,64,4], index: 2, kind: output, shape index: {0}]   ;;  %s1806_s3 = inlined_call_operand.vmem [shape: f32[2,2,4], index: 3, kind: output, shape index: {1}]  }
   0x1 LB: > { %s1313_s13 = sadd.s32 4294967295, %s1434_s12   ;;  %p1317_p0 = scmp.ge.s32.totalorder %s1434_s12, 1  ;;  %s1434_s12 = sphi %s1457_s12, %s14_s12  }
   0x2   : > { %p140_p1 = scmp.lt.s32.totalorder %s1434_s12, 3 }
   0x4   : > { %p141_p2 = pnand %p1317_p0, %p140_p1 }
   0x5   : > { %p168_p3 = scmp.lt.s32.totalorder (!%p141_p2), %s1313_s13, 1 }
   0x6   : > { %144 = sbr.rel (%p141_p2) target bundleno = 330 (0x14a), region = 28 }
   0xb   : > { %v1323_v0 = vld [vmem:[%s1804_s1 + $0x4] sm:$0xf]  ;;  %vm351_vm0 = vcmask 1043456   ;;  %vm214_vm1 = vcmask 31744   ;;  %v1342_v1 = vld [vmem:[%s1804_s1 + $0x8] sm:$0xf] }
   0xc   : > { %1416 = vmatpush.msk.msra.mxu1 %vm351_vm0, %v1323_v0  ;;  %1417 = vmatpush.msk.msra.mxu2 %vm351_vm0, %v1323_v0  ;;  %v1352_v2 = vld [vmem:[%s1804_s1 + $0xc] sm:$0xf]  ;;  %v308_v3 = vld [vmem:[%s1804_s1] sm:$0xf]  ;;  %s1808_s13 = smov (!%p168_p3, %s1313_s13), 1  ;;  %v1436_v4 = vmov 0.0  }
   0xd   : > { %1418 = vmatpush.msk.msra.mxu3 %vm351_vm0, %v1323_v0  ;;  %215 = vst.msk [vmem:[#allocation2] sm:$0xff] %vm214_vm1, %v1436_v4  ;;  %v1362_v5 = vld [vmem:[%s1804_s1 + $0x10] sm:$0xf]  ;;  %vm223_vm2 = vcmask 24576   ;;  %s1414_s24 = sshll.u32 %s1808_s13, 8  ;;  %1324 = vmatpush.msk.msra.mxu0 %vm351_vm0, %v1323_v0  ;;  %vm217_vm3 = vcmask 25600  }
   0xe   : > { %1343 = vmatpush.msk.msrb.mxu2 %vm351_vm0, %v1342_v1  ;;  %1333 = vmatpush.msk.msrb.mxu1 %vm351_vm0, %v308_v3  ;;  %216 = vst.msk [vmem:[#allocation2 + $0x8] sm:$0xff] %vm214_vm1, %v1436_v4  ;;  %s1497_s27 = scalar_lea.vmem %s1803_s0, %s1414_s24  ;;  %v1382_v25 = vld [vmem:[%s1804_s1 + $0x18] sm:$0xf]  ;;  %v1392_v27 = vld [vmem:[%s1804_s1 + $0x1c] sm:$0xf]  ;;  %s1415_s9 = sshll.u32 %s1808_s13, 6 }
   0xf   : > { %1353 = vmatpush.msk.msrb.mxu3 %vm351_vm0, %v1352_v2  ;;  %1363 = vmatpush.msk.msrb.mxu0 %vm351_vm0, %v1362_v5  ;;  %v188_v6 = vld [vmem:[%s1497_s27 + $0x30] sm:$0xff]  ;;  %v189_v7 = vld [vmem:[%s1497_s27 + $0x38] sm:$0xff]  ;;  %224 = vst.msk [vmem:[#allocation2] sm:$0x1] %vm223_vm2, %v1436_v4  ;;  %v1402_v29 = vld [vmem:[%s1804_s1 + $0x20] sm:$0xf]  ;;  %s1738_s14 = scalar_lea.vmem %s1805_s2, %s1415_s9 }
  0x10   : > { %v196_v8 = vld [vmem:[%s1497_s27 + $0x70] sm:$0xff]  ;;  %267 = vst.msk [vmem:[#allocation2 + $0x61] sm:$0xff] %vm214_vm1, %v188_v6  ;;  %v197_v9 = vld [vmem:[%s1497_s27 + $0x78] sm:$0xff]  ;;  %v182_v32 = vld [vmem:[%s1497_s27] sm:$0xff]  ;;  %s1322_s15 = sshll.u32 %s1808_s13, 1 }
  0x11   : > { %268 = vst.msk [vmem:[#allocation2 + $0x69] sm:$0xff] %vm214_vm1, %v189_v7  ;;  %v204_v10 = vld [vmem:[%s1497_s27 + $0xb0] sm:$0xff]  ;;  %v205_v11 = vld [vmem:[%s1497_s27 + $0xb8] sm:$0xff]  ;;  %v183_v33 = vld [vmem:[%s1497_s27 + $0x8] sm:$0xff]  ;;  %s181_s18 = scalar_lea.vmem %s1806_s3, %s1322_s15 }
  0x12   : > { %275 = vst.msk [vmem:[#allocation2 + $0xc1] sm:$0xff] %vm214_vm1, %v196_v8  ;;  %v192_v12 = vld [vmem:[%s1497_s27 + $0x50] sm:$0xff]  ;;  %v193_v14 = vld [vmem:[%s1497_s27 + $0x58] sm:$0xff]  ;;  %v186_v34 = vld [vmem:[%s1497_s27 + $0x20] sm:$0xff] }
  0x13   : > { %276 = vst.msk [vmem:[#allocation2 + $0xc9] sm:$0xff] %vm214_vm1, %v197_v9  ;;  %v200_v15 = vld [vmem:[%s1497_s27 + $0x90] sm:$0xff]  ;;  %v201_v16 = vld [vmem:[%s1497_s27 + $0x98] sm:$0xff]  ;;  %v187_v35 = vld [vmem:[%s1497_s27 + $0x28] sm:$0xff] }
  0x14   : > { %283 = vst.msk [vmem:[#allocation2 + $0x121] sm:$0xff] %vm214_vm1, %v204_v10  ;;  %v208_v17 = vld [vmem:[%s1497_s27 + $0xd0] sm:$0xff]  ;;  %v209_v19 = vld [vmem:[%s1497_s27 + $0xd8] sm:$0xff]  ;;  %v190_v37 = vld [vmem:[%s1497_s27 + $0x40] sm:$0xff] }
  0x15   : > { %v310_v13 = vld [vmem:[#allocation2 + $0x1] ss:$2 sm:$0xff]  ;;  %284 = vst.msk [vmem:[#allocation2 + $0x129] sm:$0xff] %vm214_vm1, %v205_v11  ;;  %v1372_v28 = vld [vmem:[%s1804_s1 + $0x14] sm:$0xf]  ;;  %v185_v31 = vld [vmem:[%s1497_s27 + $0x18] sm:$0xff] }
  0x16   : > { %1325 = vmatmul.msk.f32.vlgmr.msra.gmra.mxu0 %vm214_vm1, %v310_v13  ;;  %271 = vst.msk [vmem:[#allocation2 + $0x91] sm:$0xff] %vm214_vm1, %v192_v12  ;;  %v293_v26 = vld [vmem:[#allocation2] ss:$2 sm:$0xff]  ;;  %v184_v30 = vld [vmem:[%s1497_s27 + $0x10] sm:$0xff] }
  0x17   : > { %272 = vst.msk [vmem:[#allocation2 + $0x99] sm:$0xff] %vm214_vm1, %v193_v14  ;;  %1403 = vmatpush.msk.msra.mxu0 %vm351_vm0, %v1402_v29  ;;  %v191_v38 = vld [vmem:[%s1497_s27 + $0x48] sm:$0xff]  ;;  %v194_v39 = vld [vmem:[%s1497_s27 + $0x60] sm:$0xff]  ;;  %v213_v29 = vld [vmem:[%s1497_s27 + $0xf8] sm:$0xff] }
  0x18   : > { %v314_v18 = vld [vmem:[#allocation2 + $0x61] ss:$2 sm:$0xff]  ;;  %279 = vst.msk [vmem:[#allocation2 + $0xf1] sm:$0xff] %vm214_vm1, %v200_v15  ;;  %v469_v52 = vld [vmem:[#allocation2 + $0x62] ss:$2 sm:$0xff] }
  0x19   : > { %1327 = vmatmul.msk.f32.vlgmr.msra.gmra.mxu1 %vm214_vm1, %v314_v18  ;;  %280 = vst.msk [vmem:[#allocation2 + $0xf9] sm:$0xff] %vm214_vm1, %v201_v16  ;;  %v195_v40 = vld [vmem:[%s1497_s27 + $0x68] sm:$0xff]  ;;  %v198_v43 = vld [vmem:[%s1497_s27 + $0x80] sm:$0xff] }
  0x1a   : > { %v318_v20 = vld [vmem:[#allocation2 + $0xc1] ss:$2 sm:$0xff]  ;;  %287 = vst.msk [vmem:[#allocation2 + $0x151] sm:$0xff] %vm214_vm1, %v208_v17  ;;  %1373 = vmatpush.msk.msra.mxu1 %vm351_vm0, %v1372_v28  ;;  %v473_v0 = vld [vmem:[#allocation2 + $0xc2] ss:$2 sm:$0xff] }
  0x1b   : > { %1329 = vmatmul.msk.f32.vlgmr.msra.gmra.mxu2 %vm214_vm1, %v318_v20  ;;  %288 = vst.msk [vmem:[#allocation2 + $0x159] sm:$0xff] %vm214_vm1, %v209_v19  ;;  %v199_v45 = vld [vmem:[%s1497_s27 + $0x88] sm:$0xff]  ;;  %v202_v47 = vld [vmem:[%s1497_s27 + $0xa0] sm:$0xff]  ;;  %v212_v28 = vld [vmem:[%s1497_s27 + $0xf0] sm:$0xff] }
  0x1c   : > { %v322_v21 = vld [vmem:[#allocation2 + $0x121] ss:$2 sm:$0xff]  ;;  %1383 = vmatpush.msk.msra.mxu2 %vm351_vm0, %v1382_v25  ;;  %225 = vst.msk [vmem:[#allocation2 + $0x18] sm:$0x1] %vm223_vm2, %v1436_v4  ;;  %v477_v8 = vld [vmem:[#allocation2 + $0x122] ss:$2 sm:$0xff] }
  0x1d   : > { %1331 = vmatmul.msk.f32.vlgmr.msra.gmra.mxu3 %vm214_vm1, %v322_v21  ;;  %226 = vst.msk [vmem:[#allocation2 + $0x30] sm:$0x1] %vm223_vm2, %v1436_v4  ;;  %v203_v48 = vld [vmem:[%s1497_s27 + $0xa8] sm:$0xff]  ;;  %v206_v53 = vld [vmem:[%s1497_s27 + $0xc0] sm:$0xff] }
  0x1e   : > { %v316_v22 = vld [vmem:[#allocation2 + $0x91] ss:$2 sm:$0xff]  ;;  %1393 = vmatpush.msk.msra.mxu3 %vm351_vm0, %v1392_v27  ;;  %227 = vst.msk [vmem:[#allocation2 + $0x48] sm:$0x1] %vm223_vm2, %v1436_v4  ;;  %v207_v54 = vld [vmem:[%s1497_s27 + $0xc8] sm:$0xff]  ;;  %v210_v59 = vld [vmem:[%s1497_s27 + $0xe0] sm:$0xff] }
  0x1f   : > { %228 = vst.msk [vmem:[#allocation2 + $0x60] sm:$0x1] %vm223_vm2, %v1436_v4  ;;  %v471_v58 = vld [vmem:[#allocation2 + $0x92] ss:$2 sm:$0xff]  ;;  %v211_v60 = vld [vmem:[%s1497_s27 + $0xe8] sm:$0xff] }
  0x20   : > { %v320_v23 = vld [vmem:[#allocation2 + $0xf1] ss:$2 sm:$0xff]  ;;  %229 = vst.msk [vmem:[#allocation2 + $0x78] sm:$0x1] %vm223_vm2, %v1436_v4  ;;  %v1030_v25 = vld [vmem:[#allocation2 + $0x62] ss:$2 sm:$0xff] }
  0x21   : > { %1328 = vmatmul.msk.f32.gmra.mxu1 %vm214_vm1, %v316_v22  ;;  %230 = vst.msk [vmem:[#allocation2 + $0x90] sm:$0x1] %vm223_vm2, %v1436_v4  ;;  %v938_v27 = vld [vmem:[#allocation2 + $0x91] ss:$2 sm:$0xff] }
  0x22   : > { %v324_v24 = vld [vmem:[#allocation2 + $0x151] ss:$2 sm:$0xff]  ;;  %231 = vst.msk [vmem:[#allocation2 + $0xa8] sm:$0x1] %vm223_vm2, %v1436_v4  ;;  %v479_v12 = vld [vmem:[#allocation2 + $0x152] ss:$2 sm:$0xff] }
  0x23   : > { %1330 = vmatmul.msk.f32.gmra.mxu2 %vm214_vm1, %v320_v23  ;;  %232 = vst.msk [vmem:[#allocation2 + $0xc0] sm:$0x1] %vm223_vm2, %v1436_v4  ;;  %v936_v23 = vld [vmem:[#allocation2 + $0x61] ss:$2 sm:$0xff] }
  0x24   : > { %233 = vst.msk [vmem:[#allocation2 + $0xd8] sm:$0x1] %vm223_vm2, %v1436_v4 }
  0x25   : > { %1332 = vmatmul.msk.f32.gmra.mxu3 %vm214_vm1, %v324_v24  ;;  %234 = vst.msk [vmem:[#allocation2 + $0xf0] sm:$0x1] %vm223_vm2, %v1436_v4 }
  0x26   : > { %235 = vst.msk [vmem:[#allocation2 + $0x108] sm:$0x1] %vm223_vm2, %v1436_v4  ;;  %v297_v50 = vld [vmem:[#allocation2 + $0x60] ss:$2 sm:$0xff] }
  0x27   : > { %236 = vst.msk [vmem:[#allocation2 + $0x120] sm:$0x1] %vm223_vm2, %v1436_v4  ;;  %v842_v20 = vld [vmem:[#allocation2 + $0x60] ss:$2 sm:$0xff] }
  0x28   : > { %237 = vst.msk [vmem:[#allocation2 + $0x138] sm:$0x1] %vm223_vm2, %v1436_v4  ;;  %v299_v56 = vld [vmem:[#allocation2 + $0x90] ss:$2 sm:$0xff] }
  0x29   : > { %1334 = vmatmul.msk.f32.vlgmr.msrb.gmra.mxu1 %vm214_vm1, %v293_v26  ;;  %238 = vst.msk [vmem:[#allocation2 + $0x150] sm:$0x1] %vm223_vm2, %v1436_v4  ;;  %v844_v24 = vld [vmem:[#allocation2 + $0x90] ss:$2 sm:$0xff] }
  0x2a   : > { %239 = vst.msk [vmem:[#allocation2 + $0x168] sm:$0x1] %vm223_vm2, %v1436_v4  ;;  %v301_v62 = vld [vmem:[#allocation2 + $0xc0] ss:$2 sm:$0xff] }
  0x2b   : > { %240 = vst.msk [vmem:[#allocation2 + $0x180] sm:$0x1] %vm223_vm2, %v1436_v4 }
  0x2c   : > { %218 = vst.msk [vmem:[#allocation2 + $0x10] sm:$0x3] %vm217_vm3, %v1436_v4  ;;  %v303_v2 = vld [vmem:[#allocation2 + $0xf0] ss:$2 sm:$0xff] }
  0x2d   : > { %263 = vst.msk [vmem:[#allocation2 + $0x31] sm:$0xff] %vm214_vm1, %v184_v30  ;;  %v475_v4 = vld [vmem:[#allocation2 + $0xf2] ss:$2 sm:$0xff] }
  0x2e   : > { %264 = vst.msk [vmem:[#allocation2 + $0x39] sm:$0xff] %vm214_vm1, %v185_v31  ;;  %v305_v6 = vld [vmem:[#allocation2 + $0x120] ss:$2 sm:$0xff] }
  0x2f   : > { %261 = vst.msk [vmem:[#allocation2 + $0x19] sm:$0xff] %vm214_vm1, %v182_v32  ;;  %v846_v30 = vld [vmem:[#allocation2 + $0xc0] ss:$2 sm:$0xff] }
  0x30   : > { %262 = vst.msk [vmem:[#allocation2 + $0x21] sm:$0xff] %vm214_vm1, %v183_v33  ;;  %v307_v10 = vld [vmem:[#allocation2 + $0x150] ss:$2 sm:$0xff]  ;;  %v940_v33 = vld [vmem:[#allocation2 + $0xc1] ss:$2 sm:$0xff] }
  0x31   : > { %265 = vst.msk [vmem:[#allocation2 + $0x49] sm:$0xff] %vm214_vm1, %v186_v34  ;;  %v1032_v31 = vld [vmem:[#allocation2 + $0x92] ss:$2 sm:$0xff] }
  0x32   : > { %266 = vst.msk [vmem:[#allocation2 + $0x51] sm:$0xff] %vm214_vm1, %v187_v35  ;;  %v848_v34 = vld [vmem:[#allocation2 + $0xf0] ss:$2 sm:$0xff] }
  0x33   : > { %v465_v36 = vld [vmem:[#allocation2 + $0x2] ss:$2 sm:$0xff]  ;;  %269 = vst.msk [vmem:[#allocation2 + $0x79] sm:$0xff] %vm214_vm1, %v190_v37  ;;  %v942_v37 = vld [vmem:[#allocation2 + $0xf1] ss:$2 sm:$0xff] }
  0x34   : > { %1344 = vmatmul.msk.f32.vlgmr.msrb.gmra.mxu2 %vm214_vm1, %v465_v36  ;;  %270 = vst.msk [vmem:[#allocation2 + $0x81] sm:$0xff] %vm214_vm1, %v191_v38  ;;  %v1034_v35 = vld [vmem:[#allocation2 + $0xc2] ss:$2 sm:$0xff] }
  0x35   : > { %v312_v41 = vld [vmem:[#allocation2 + $0x31] ss:$2 sm:$0xff]  ;;  %v295_v42 = vld [vmem:[#allocation2 + $0x30] ss:$2 sm:$0xff]  ;;  %273 = vst.msk [vmem:[#allocation2 + $0xa9] sm:$0xff] %vm214_vm1, %v194_v39 }
  0x36   : > { %1326 = vmatmul.msk.f32.gmra.mxu0 %vm214_vm1, %v312_v41  ;;  %1335 = vmatmul.msk.f32.gmra.mxu1 %vm214_vm1, %v295_v42  ;;  %v467_v44 = vld [vmem:[#allocation2 + $0x32] ss:$2 sm:$0xff]  ;;  %274 = vst.msk [vmem:[#allocation2 + $0xb1] sm:$0xff] %vm214_vm1, %v195_v40  ;;  %v934_v19 = vld [vmem:[#allocation2 + $0x31] ss:$2 sm:$0xff] }
  0x37   : > { %v558_v46 = vld [vmem:[#allocation2 + $0x18] ss:$2 sm:$0xff]  ;;  %277 = vst.msk [vmem:[#allocation2 + $0xd9] sm:$0xff] %vm214_vm1, %v198_v43  ;;  %v652_v49 = vld [vmem:[#allocation2 + $0x19] ss:$2 sm:$0xff] }
  0x38   : > { %1354 = vmatmul.msk.f32.vlgmr.msrb.gmra.mxu3 %vm214_vm1, %v558_v46  ;;  %278 = vst.msk [vmem:[#allocation2 + $0xe1] sm:$0xff] %vm214_vm1, %v199_v45  ;;  %v746_v14 = vld [vmem:[#allocation2 + $0x1a] ss:$2 sm:$0xff]  ;;  %v944_v42 = vld [vmem:[#allocation2 + $0x121] ss:$2 sm:$0xff] }
  0x39   : > { %281 = vst.msk [vmem:[#allocation2 + $0x109] sm:$0xff] %vm214_vm1, %v202_v47  ;;  %v560_v51 = vld [vmem:[#allocation2 + $0x48] ss:$2 sm:$0xff]  ;;  %v654_v55 = vld [vmem:[#allocation2 + $0x49] ss:$2 sm:$0xff] }
  0x3a   : > { %282 = vst.msk [vmem:[#allocation2 + $0x111] sm:$0xff] %vm214_vm1, %v203_v48  ;;  %v840_v16 = vld [vmem:[#allocation2 + $0x30] ss:$2 sm:$0xff]  ;;  %v850_v39 = vld [vmem:[#allocation2 + $0x120] ss:$2 sm:$0xff] }
  0x3b   : > { %285 = vst.msk [vmem:[#allocation2 + $0x139] sm:$0xff] %vm214_vm1, %v206_v53  ;;  %v562_v57 = vld [vmem:[#allocation2 + $0x78] ss:$2 sm:$0xff]  ;;  %v656_v61 = vld [vmem:[#allocation2 + $0x79] ss:$2 sm:$0xff] }
  0x3c   : > { %1345 = vmatmul.msk.f32.gmra.mxu2 %vm214_vm1, %v467_v44  ;;  %286 = vst.msk [vmem:[#allocation2 + $0x141] sm:$0xff] %vm214_vm1, %v207_v54  ;;  %v748_v18 = vld [vmem:[#allocation2 + $0x4a] ss:$2 sm:$0xff]  ;;  %v750_v22 = vld [vmem:[#allocation2 + $0x7a] ss:$2 sm:$0xff] }
  0x3d   : > { %289 = vst.msk [vmem:[#allocation2 + $0x169] sm:$0xff] %vm214_vm1, %v210_v59  ;;  %v564_v63 = vld [vmem:[#allocation2 + $0xa8] ss:$2 sm:$0xff]  ;;  %v658_v1 = vld [vmem:[#allocation2 + $0xa9] ss:$2 sm:$0xff] }
  0x3e   : > { %1364 = vmatmul.msk.f32.vlgmr.msrb.gmra.mxu0 %vm214_vm1, %v652_v49  ;;  %1336 = vmatmul.msk.f32.gmra.mxu1 %vm214_vm1, %v297_v50  ;;  %290 = vst.msk [vmem:[#allocation2 + $0x171] sm:$0xff] %vm214_vm1, %v211_v60  ;;  %v1028_v21 = vld [vmem:[#allocation2 + $0x32] ss:$2 sm:$0xff]  ;;  %v1038_v46 = vld [vmem:[#allocation2 + $0x122] ss:$2 sm:$0xff] }
  0x3f   : > { %v566_v3 = vld [vmem:[#allocation2 + $0xd8] ss:$2 sm:$0xff]  ;;  %v660_v5 = vld [vmem:[#allocation2 + $0xd9] ss:$2 sm:$0xff]  ;;  %291 = vst.msk [vmem:[#allocation2 + $0x181] sm:$0xff] %vm214_vm1, %v212_v28 }
  0x40   : > { %1355 = vmatmul.msk.f32.gmra.mxu3 %vm214_vm1, %v560_v51  ;;  %v752_v26 = vld [vmem:[#allocation2 + $0xaa] ss:$2 sm:$0xff]  ;;  %292 = vst.msk [vmem:[#allocation2 + $0x189] sm:$0xff] %vm214_vm1, %v213_v29  ;;  %v754_v32 = vld [vmem:[#allocation2 + $0xda] ss:$2 sm:$0xff] }
  0x41   : > { %v568_v7 = vld [vmem:[#allocation2 + $0x108] ss:$2 sm:$0xff]  ;;  %v662_v9 = vld [vmem:[#allocation2 + $0x109] ss:$2 sm:$0xff] }
  0x42   : > { %v756_v36 = vld [vmem:[#allocation2 + $0x10a] ss:$2 sm:$0xff]  ;;  %v946_v48 = vld [vmem:[#allocation2 + $0x151] ss:$2 sm:$0xff] }
  0x43   : > { %v570_v11 = vld [vmem:[#allocation2 + $0x138] ss:$2 sm:$0xff]  ;;  %v664_v13 = vld [vmem:[#allocation2 + $0x139] ss:$2 sm:$0xff] }
  0x44   : > { %1346 = vmatmul.msk.f32.gmra.mxu2 %vm214_vm1, %v469_v52  ;;  %v1036_v40 = vld [vmem:[#allocation2 + $0xf2] ss:$2 sm:$0xff] }
  0x45   : > { %v572_v15 = vld [vmem:[#allocation2 + $0x168] ss:$2 sm:$0xff]  ;;  %v666_v17 = vld [vmem:[#allocation2 + $0x169] ss:$2 sm:$0xff] }
  0x46   : > { %1365 = vmatmul.msk.f32.gmra.mxu0 %vm214_vm1, %v654_v55  ;;  %1337 = vmatmul.msk.f32.gmra.mxu1 %vm214_vm1, %v299_v56  ;;  %v758_v41 = vld [vmem:[#allocation2 + $0x13a] ss:$2 sm:$0xff]  ;;  %v760_v47 = vld [vmem:[#allocation2 + $0x16a] ss:$2 sm:$0xff] }
  0x47   : > { %v852_v43 = vld [vmem:[#allocation2 + $0x150] ss:$2 sm:$0xff]  ;;  %v854_v49 = vld [vmem:[#allocation2 + $0x180] ss:$2 sm:$0xff]  ;;  %v948_v55 = vld [vmem:[#allocation2 + $0x181] ss:$2 sm:$0xff] }
  0x48   : > { %1356 = vmatmul.msk.f32.gmra.mxu3 %vm214_vm1, %v562_v57  ;;  %v1040_v54 = vld [vmem:[#allocation2 + $0x152] ss:$2 sm:$0xff] }
  0x4c   : > { %1347 = vmatmul.msk.f32.gmra.mxu2 %vm214_vm1, %v471_v58  ;;  %v1042_v58 = vld [vmem:[#allocation2 + $0x182] ss:$2 sm:$0xff] }
  0x4e   : > { %1366 = vmatmul.msk.f32.gmra.mxu0 %vm214_vm1, %v656_v61  ;;  %1338 = vmatmul.msk.f32.gmra.mxu1 %vm214_vm1, %v301_v62 }
  0x50   : > { %1357 = vmatmul.msk.f32.gmra.mxu3 %vm214_vm1, %v564_v63 }
  0x54   : > { %1348 = vmatmul.msk.f32.gmra.mxu2 %vm214_vm1, %v473_v0 }
  0x56   : > { %1367 = vmatmul.msk.f32.gmra.mxu0 %vm214_vm1, %v658_v1  ;;  %1339 = vmatmul.msk.f32.gmra.mxu1 %vm214_vm1, %v303_v2 }
  0x58   : > { %1358 = vmatmul.msk.f32.gmra.mxu3 %vm214_vm1, %v566_v3 }
  0x5c   : > { %1349 = vmatmul.msk.f32.gmra.mxu2 %vm214_vm1, %v475_v4 }
  0x5e   : > { %1368 = vmatmul.msk.f32.gmra.mxu0 %vm214_vm1, %v660_v5  ;;  %1340 = vmatmul.msk.f32.gmra.mxu1 %vm214_vm1, %v305_v6 }
  0x60   : > { %1359 = vmatmul.msk.f32.gmra.mxu3 %vm214_vm1, %v568_v7 }
  0x64   : > { %1350 = vmatmul.msk.f32.gmra.mxu2 %vm214_vm1, %v477_v8 }
  0x66   : > { %1369 = vmatmul.msk.f32.gmra.mxu0 %vm214_vm1, %v662_v9  ;;  %1341 = vmatmul.msk.f32.gmra.mxu1 %vm214_vm1, %v307_v10 }
  0x68   : > { %1360 = vmatmul.msk.f32.gmra.mxu3 %vm214_vm1, %v570_v11 }
  0x6c   : > { %1351 = vmatmul.msk.f32.gmra.mxu2 %vm214_vm1, %v479_v12 }
  0x6e   : > { %1370 = vmatmul.msk.f32.gmra.mxu0 %vm214_vm1, %v664_v13  ;;  %1374 = vmatmul.msk.f32.vlgmr.msra.gmra.mxu1 %vm214_vm1, %v746_v14 }
  0x70   : > { %1361 = vmatmul.msk.f32.gmra.mxu3 %vm214_vm1, %v572_v15 }
  0x74   : > { %1384 = vmatmul.msk.f32.vlgmr.msra.gmra.mxu2 %vm214_vm1, %v840_v16 }
  0x76   : > { %1371 = vmatmul.msk.f32.gmra.mxu0 %vm214_vm1, %v666_v17  ;;  %1375 = vmatmul.msk.f32.gmra.mxu1 %vm214_vm1, %v748_v18 }
  0x78   : > { %1394 = vmatmul.msk.f32.vlgmr.msra.gmra.mxu3 %vm214_vm1, %v934_v19 }
  0x7c   : > { %1385 = vmatmul.msk.f32.gmra.mxu2 %vm214_vm1, %v842_v20 }
  0x7e   : > { %1404 = vmatmul.msk.f32.vlgmr.msra.gmra.mxu0 %vm214_vm1, %v1028_v21  ;;  %1376 = vmatmul.msk.f32.gmra.mxu1 %vm214_vm1, %v750_v22 }
  0x80   : > { %1395 = vmatmul.msk.f32.gmra.mxu3 %vm214_vm1, %v936_v23 }
  0x84   : > { %1386 = vmatmul.msk.f32.gmra.mxu2 %vm214_vm1, %v844_v24 }
  0x86   : > { %1405 = vmatmul.msk.f32.gmra.mxu0 %vm214_vm1, %v1030_v25  ;;  %1377 = vmatmul.msk.f32.gmra.mxu1 %vm214_vm1, %v752_v26 }
  0x88   : > { %1396 = vmatmul.msk.f32.gmra.mxu3 %vm214_vm1, %v938_v27 }
  0x8c   : > { %1387 = vmatmul.msk.f32.gmra.mxu2 %vm214_vm1, %v846_v30 }
  0x8e   : > { %1406 = vmatmul.msk.f32.gmra.mxu0 %vm214_vm1, %v1032_v31  ;;  %1378 = vmatmul.msk.f32.gmra.mxu1 %vm214_vm1, %v754_v32 }
  0x90   : > { %1397 = vmatmul.msk.f32.gmra.mxu3 %vm214_vm1, %v940_v33 }
  0x93   : > { %v372_v51 = vpop.f32.mrf.mxu0 }
  0x94   : > { %1388 = vmatmul.msk.f32.gmra.mxu2 %vm214_vm1, %v848_v34 }
  0x96   : > { %v1672_v38 = vpop.f32.mrf.mxu1  ;;  %1407 = vmatmul.msk.f32.gmra.mxu0 %vm214_vm1, %v1034_v35  ;;  %1379 = vmatmul.msk.f32.gmra.mxu1 %vm214_vm1, %v756_v36 }
  0x98   : > { %1398 = vmatmul.msk.f32.gmra.mxu3 %vm214_vm1, %v942_v37 }
  0x9c   : > { %1389 = vmatmul.msk.f32.gmra.mxu2 %vm214_vm1, %v850_v39 }
  0x9e   : > { %1408 = vmatmul.msk.f32.gmra.mxu0 %vm214_vm1, %v1036_v40  ;;  %1380 = vmatmul.msk.f32.gmra.mxu1 %vm214_vm1, %v758_v41  ;;  %v1680_v44 = vpop.f32.mrf.mxu1  ;;  %v1683_v45 = vpop.f32.mrf.mxu2 }
  0xa0   : > { %1399 = vmatmul.msk.f32.gmra.mxu3 %vm214_vm1, %v944_v42  ;;  %v1688_v50 = vpop.f32.mrf.mxu3 }
  0xa4   : > { %1390 = vmatmul.msk.f32.gmra.mxu2 %vm214_vm1, %v852_v43 }
  0xa6   : > { %1409 = vmatmul.msk.f32.gmra.mxu0 %vm214_vm1, %v1038_v46  ;;  %1381 = vmatmul.msk.f32.gmra.mxu1 %vm214_vm1, %v760_v47  ;;  %v440_v52 = vpop.f32.mrf.mxu1  ;;  %v1692_v53 = vpop.f32.mrf.mxu2 }
  0xa7   : > { %v441_v21 = vadd.f32 %v440_v52, %v372_v51 }
  0xa8   : > { %1400 = vmatmul.msk.f32.gmra.mxu3 %vm214_vm1, %v946_v48  ;;  %v1696_v56 = vpop.f32.mrf.mxu3 }
  0xac   : > { %1391 = vmatmul.msk.f32.gmra.mxu2 %vm214_vm1, %v854_v49 }
  0xae   : > { %1410 = vmatmul.msk.f32.gmra.mxu0 %vm214_vm1, %v1040_v54 }
  0xb0   : > { %1401 = vmatmul.msk.f32.gmra.mxu3 %vm214_vm1, %v948_v55 }
  0xb3   : > { %v375_v57 = vpop.f32.mrf.mxu0  ;;  %v443_v59 = vpop.f32.mrf.mxu1 }
  0xb4   : > { %v444_v28 = vadd.f32 %v443_v59, %v375_v57 }
  0xb6   : > { %1411 = vmatmul.msk.f32.gmra.mxu0 %vm214_vm1, %v1042_v58 }
  0xb7   : > { %v526_v60 = vpop.f32.mrf.mxu2 }
  0xb8   : > { %v550_v24 = vadd.f32 %v526_v60, %v441_v21 }
  0xbb   : > { %v619_v61 = vpop.f32.mrf.mxu3  ;;  %v713_v62 = vpop.f32.mrf.mxu0 }
  0xbc   : > { %v446_v0 = vpop.f32.mrf.mxu1  ;;  %v643_v27 = vadd.f32 %v619_v61, %v550_v24 }
  0xbd   : > { %v447_v39 = vadd.f32 %v446_v0, %v1672_v38 }
  0xbe   : > { %v737_v31 = vadd.f32 %v713_v62, %v643_v27 }
  0xbf   : > { %v529_v63 = vpop.f32.mrf.mxu2 }
  0xc0   : > { %v551_v32 = vadd.f32 %v529_v63, %v444_v28 }
  0xc3   : > { %v622_v1 = vpop.f32.mrf.mxu3  ;;  %v716_v2 = vpop.f32.mrf.mxu0 }
  0xc4   : > { %v449_v4 = vpop.f32.mrf.mxu1  ;;  %v644_v36 = vadd.f32 %v622_v1, %v551_v32 }
  0xc5   : > { %v450_v54 = vadd.f32 %v449_v4, %v1680_v44 }
  0xc6   : > { %v738_v42 = vadd.f32 %v716_v2, %v644_v36 }
  0xc7   : > { %v532_v3 = vpop.f32.mrf.mxu2 }
  0xc8   : > { %v552_v43 = vadd.f32 %v532_v3, %v447_v39 }
  0xcb   : > { %v625_v5 = vpop.f32.mrf.mxu3  ;;  %v719_v6 = vpop.f32.mrf.mxu0 }
  0xcc   : > { %v1699_v8 = vpop.f32.mrf.mxu1  ;;  %v645_v52 = vadd.f32 %v625_v5, %v552_v43 }
  0xcd   : > { %v453_v4 = vadd.f32 %v1699_v8, %v1683_v45 }
  0xce   : > { %v739_v59 = vadd.f32 %v719_v6, %v645_v52 }
  0xcf   : > { %v535_v7 = vpop.f32.mrf.mxu2 }
  0xd0   : > { %v553_v55 = vadd.f32 %v535_v7, %v450_v54 }
  0xd3   : > { %v628_v9 = vpop.f32.mrf.mxu3  ;;  %v1701_v10 = vpop.f32.mrf.mxu0 }
  0xd4   : > { %v1705_v12 = vpop.f32.mrf.mxu1  ;;  %v646_v2 = vadd.f32 %v628_v9, %v553_v55 }
  0xd6   : > { %v740_v28 = vadd.f32 %v1701_v10, %v646_v2  ;;  %v456_v10 = vadd.f32 %v1705_v12, %v1692_v53 }
  0xd7   : > { %v1703_v11 = vpop.f32.mrf.mxu2 }
  0xdb   : > { %v1707_v13 = vpop.f32.mrf.mxu3  ;;  %v1709_v14 = vpop.f32.mrf.mxu0 }
  0xdc   : > { %v1713_v16 = vpop.f32.mrf.mxu1 }
  0xdf   : > { %v1711_v15 = vpop.f32.mrf.mxu2 }
  0xe3   : > { %v1715_v17 = vpop.f32.mrf.mxu3  ;;  %v1717_v18 = vpop.f32.mrf.mxu0 }
  0xe4   : > { %v1721_v20 = vpop.f32.mrf.mxu1 }
  0xe7   : > { %v1719_v19 = vpop.f32.mrf.mxu2 }
  0xeb   : > { %v1723_v22 = vpop.f32.mrf.mxu3  ;;  %v1725_v23 = vpop.f32.mrf.mxu0 }
  0xec   : > { %v807_v26 = vpop.f32.mrf.mxu1 }
  0xed   : > { %v831_v35 = vadd.f32 %v807_v26, %v737_v31  ;;  %v554_v31 = vadd.f32 %v1703_v11, %v453_v4 }
  0xef   : > { %v1727_v25 = vpop.f32.mrf.mxu2 }
  0xf3   : > { %v1729_v29 = vpop.f32.mrf.mxu3  ;;  %v1731_v30 = vpop.f32.mrf.mxu0 }
  0xf4   : > { %v810_v34 = vpop.f32.mrf.mxu1 }
  0xf5   : > { %v832_v49 = vadd.f32 %v810_v34, %v738_v42 }
  0xf7   : > { %v901_v33 = vpop.f32.mrf.mxu2 }
  0xf8   : > { %v925_v37 = vadd.f32 %v901_v33, %v831_v35 }
  0xfb   : > { %v995_v40 = vpop.f32.mrf.mxu3  ;;  %v1089_v41 = vpop.f32.mrf.mxu0 }
  0xfc   : > { %v1019_v46 = vadd.f32 %v995_v40, %v925_v37  ;;  %v813_v48 = vpop.f32.mrf.mxu1  ;;  %v647_v37 = vadd.f32 %v1707_v13, %v554_v31  ;;  %v555_v13 = vadd.f32 %v1711_v15, %v456_v10 }
  0xfd   : > { %v833_v0 = vadd.f32 %v813_v48, %v739_v59 }
  0xfe   : > { %v1113_v51 = vadd.f32 %v1089_v41, %v1019_v46  ;;  %v741_v46 = vadd.f32 %v1709_v14, %v647_v37  ;;  %v459_v14 = vadd.f32 %v1713_v16, %v1688_v50 }
  0xff   : > { %v904_v47 = vpop.f32.mrf.mxu2 }
 0x100   : > { %1173 = vst.msk [vmem:[%s1738_s14] sm:$0xff] %vm214_vm1, %v1113_v51  ;;  %v926_v38 = vadd.f32 %v904_v47, %v832_v49  ;;  %v1143_v63 = vmul.f32 %v1113_v51, %v1113_v51  ;;  %v1121_v3 = vsel %vm214_vm1, %v1113_v51, 0.0 }
 0x102   : > { %v1151_v6 = vsel %vm214_vm1, %v1143_v63, 0.0 }
 0x103   : > { %v998_v57 = vpop.f32.mrf.mxu3  ;;  %v1092_v58 = vpop.f32.mrf.mxu0 }
 0x104   : > { %v1020_v60 = vadd.f32 %v998_v57, %v926_v38  ;;  %v816_v62 = vpop.f32.mrf.mxu1  ;;  %v648_v38 = vadd.f32 %v1715_v17, %v555_v13  ;;  %v556_v17 = vadd.f32 %v1719_v19, %v459_v14 }
 0x105   : > { %v834_v35 = vadd.f32 %v816_v62, %v740_v28 }
 0x106   : > { %v1114_v1 = vadd.f32 %v1092_v58, %v1020_v60  ;;  %v742_v60 = vadd.f32 %v1717_v18, %v648_v38  ;;  %v462_v18 = vadd.f32 %v1721_v20, %v1696_v56 }
 0x107   : > { %v907_v61 = vpop.f32.mrf.mxu2 }
 0x108   : > { %v1122_v5 = vsel %vm214_vm1, %v1114_v1, 0.0  ;;  %v1144_v21 = vmul.f32 %v1114_v1, %v1114_v1  ;;  %1174 = vst.msk [vmem:[%s1738_s14 + $0x8] sm:$0xff] %vm214_vm1, %v1114_v1  ;;  %v927_v24 = vadd.f32 %v907_v61, %v833_v0  ;;  %v649_v1 = vadd.f32 %v1723_v22, %v556_v17 }
 0x109   : > { %v1123_v44 = vadd.f32 %v1122_v5, %v1121_v3  ;;  %v557_v22 = vadd.f32 %v1727_v25, %v462_v18 }
 0x10a   : > { %v1152_v7 = vsel %vm214_vm1, %v1144_v21, 0.0  ;;  %v743_v4 = vadd.f32 %v1725_v23, %v649_v1 }
 0x10b   : > { %v1153_v26 = vadd.f32 %v1152_v7, %v1151_v6  ;;  %v1001_v27 = vpop.f32.mrf.mxu3  ;;  %v1095_v9 = vpop.f32.mrf.mxu0 }
 0x10c   : > { %v1021_v32 = vadd.f32 %v1001_v27, %v927_v24  ;;  %v819_v34 = vpop.f32.mrf.mxu1 }
 0x10d   : > { %v835_v49 = vadd.f32 %v819_v34, %v741_v46 }
 0x10e   : > { %v1115_v36 = vadd.f32 %v1095_v9, %v1021_v32  ;;  %v650_v9 = vadd.f32 %v1729_v29, %v557_v22 }
 0x10f   : > { %v910_v33 = vpop.f32.mrf.mxu2 }
 0x110   : > { %v1124_v45 = vsel %vm214_vm1, %v1115_v36, 0.0  ;;  %v1145_v8 = vmul.f32 %v1115_v36, %v1115_v36  ;;  %1175 = vst.msk [vmem:[%s1738_s14 + $0x10] sm:$0xff] %vm214_vm1, %v1115_v36  ;;  %v928_v39 = vadd.f32 %v910_v33, %v834_v35  ;;  %v744_v35 = vadd.f32 %v1731_v30, %v650_v9 }
 0x111   : > { %v1125_v40 = vadd.f32 %v1124_v45, %v1123_v44 }
 0x112   : > { %v1154_v11 = vsel %vm214_vm1, %v1145_v8, 0.0 }
 0x113   : > { %v1155_v41 = vadd.f32 %v1154_v11, %v1153_v26  ;;  %v1004_v42 = vpop.f32.mrf.mxu3  ;;  %v1098_v43 = vpop.f32.mrf.mxu0 }
 0x114   : > { %v1022_v47 = vadd.f32 %v1004_v42, %v928_v39  ;;  %v822_v52 = vpop.f32.mrf.mxu1 }
 0x115   : > { %v836_v63 = vadd.f32 %v822_v52, %v742_v60 }
 0x116   : > { %v1116_v51 = vadd.f32 %v1098_v43, %v1022_v47 }
 0x117   : > { %v913_v48 = vpop.f32.mrf.mxu2 }
 0x118   : > { %v1126_v54 = vsel %vm214_vm1, %v1116_v51, 0.0  ;;  %v1146_v55 = vmul.f32 %v1116_v51, %v1116_v51  ;;  %1176 = vst.msk [vmem:[%s1738_s14 + $0x18] sm:$0xff] %vm214_vm1, %v1116_v51  ;;  %v929_v53 = vadd.f32 %v913_v48, %v835_v49 }
 0x119   : > { %v1127_v12 = vadd.f32 %v1126_v54, %v1125_v40 }
 0x11a   : > { %v1156_v15 = vsel %vm214_vm1, %v1146_v55, 0.0 }
 0x11b   : > { %v1157_v57 = vadd.f32 %v1156_v15, %v1155_v41  ;;  %v1007_v58 = vpop.f32.mrf.mxu3  ;;  %v1101_v59 = vpop.f32.mrf.mxu0 }
 0x11c   : > { %v1023_v61 = vadd.f32 %v1007_v58, %v929_v53  ;;  %v825_v16 = vpop.f32.mrf.mxu1 }
 0x11d   : > { %v837_v26 = vadd.f32 %v825_v16, %v743_v4 }
 0x11e   : > { %v1117_v0 = vadd.f32 %v1101_v59, %v1023_v61 }
 0x11f   : > { %v916_v62 = vpop.f32.mrf.mxu2 }
 0x120   : > { %v1128_v2 = vsel %vm214_vm1, %v1117_v0, 0.0  ;;  %v1147_v3 = vmul.f32 %v1117_v0, %v1117_v0  ;;  %1177 = vst.msk [vmem:[%s1738_s14 + $0x20] sm:$0xff] %vm214_vm1, %v1117_v0  ;;  %v930_v50 = vadd.f32 %v916_v62, %v836_v63 }
 0x121   : > { %v1129_v5 = vadd.f32 %v1128_v2, %v1127_v12 }
 0x122   : > { %v1158_v19 = vsel %vm214_vm1, %v1147_v3, 0.0 }
 0x123   : > { %v1159_v21 = vadd.f32 %v1158_v19, %v1157_v57  ;;  %v1010_v24 = vpop.f32.mrf.mxu3  ;;  %v1104_v44 = vpop.f32.mrf.mxu0 }
 0x124   : > { %v1024_v6 = vadd.f32 %v1010_v24, %v930_v50  ;;  %v828_v33 = vpop.f32.mrf.mxu1 }
 0x125   : > { %v838_v29 = vadd.f32 %v828_v33, %v744_v35 }
 0x126   : > { %v1118_v27 = vadd.f32 %v1104_v44, %v1024_v6 }
 0x127   : > { %v919_v7 = vpop.f32.mrf.mxu2 }
 0x128   : > { %v1130_v28 = vsel %vm214_vm1, %v1118_v27, 0.0  ;;  %v1148_v31 = vmul.f32 %v1118_v27, %v1118_v27  ;;  %1178 = vst.msk [vmem:[%s1738_s14 + $0x28] sm:$0xff] %vm214_vm1, %v1118_v27  ;;  %v931_v56 = vadd.f32 %v919_v7, %v837_v26 }
 0x129   : > { %v1131_v20 = vadd.f32 %v1130_v28, %v1129_v5 }
 0x12a   : > { %v1160_v32 = vsel %vm214_vm1, %v1148_v31, 0.0 }
 0x12b   : > { %v1161_v23 = vadd.f32 %v1160_v32, %v1159_v21  ;;  %v1013_v34 = vpop.f32.mrf.mxu3  ;;  %v1107_v25 = vpop.f32.mrf.mxu0 }
 0x12c   : > { %v1025_v36 = vadd.f32 %v1013_v34, %v931_v56 }
 0x12e   : > { %v1119_v45 = vadd.f32 %v1107_v25, %v1025_v36 }
 0x12f   : > { %v922_v37 = vpop.f32.mrf.mxu2 }
 0x130   : > { %1179 = vst.msk [vmem:[%s1738_s14 + $0x30] sm:$0xff] %vm214_vm1, %v1119_v45  ;;  %v932_v8 = vadd.f32 %v922_v37, %v838_v29  ;;  %v1149_v39 = vmul.f32 %v1119_v45, %v1119_v45  ;;  %v1132_v11 = vsel %vm214_vm1, %v1119_v45, 0.0 }
 0x131   : > { %v1133_v46 = vadd.f32 %v1132_v11, %v1131_v20 }
 0x132   : > { %v1162_v42 = vsel %vm214_vm1, %v1149_v39, 0.0 }
 0x133   : > { %v1016_v40 = vpop.f32.mrf.mxu3  ;;  %v1110_v10 = vpop.f32.mrf.mxu0  ;;  %v1163_v47 = vadd.f32 %v1162_v42, %v1161_v23 }
 0x134   : > { %v1026_v41 = vadd.f32 %v1016_v40, %v932_v8 }
 0x136   : > { %v1120_v43 = vadd.f32 %v1110_v10, %v1026_v41 }
 0x138   : > { %v1134_v30 = vsel %vm214_vm1, %v1120_v43, 0.0  ;;  %v1150_v13 = vmul.f32 %v1120_v43, %v1120_v43  ;;  %1180 = vst.msk [vmem:[%s1738_s14 + $0x38] sm:$0xff] %vm214_vm1, %v1120_v43 }
 0x139   : > { %v1135_v48 = vadd.f32 %v1134_v30, %v1133_v46 }
 0x13a   : > { %v1164_v49 = vsel %vm214_vm1, %v1150_v13, 0.0 }
 0x13b   : > { %v1136_v51 = vrot.slane %v1135_v48, 4  ;;  %v1165_v52 = vadd.f32 %v1164_v49, %v1163_v47 }
 0x13d   : > { %v1137_v38 = vadd.f32 %v1136_v51, %v1135_v48  ;;  %v1166_v54 = vrot.slane %v1165_v52, 4 }
 0x13f   : > { %v1138_v55 = vrot.slane %v1137_v38, 2  ;;  %v1167_v53 = vadd.f32 %v1166_v54, %v1165_v52 }
 0x141   : > { %v1139_v12 = vadd.f32 %v1138_v55, %v1137_v38  ;;  %v1168_v14 = vrot.slane %v1167_v53, 2 }
 0x143   : > { %v1140_v15 = vrot.slane %v1139_v12, 1  ;;  %v1169_v57 = vadd.f32 %v1168_v14, %v1167_v53 }
 0x145   : > { %v1141_v58 = vadd.f32 %v1140_v15, %v1139_v12  ;;  %v1170_v59 = vrot.slane %v1169_v57, 1 }
 0x147   : > { %1142 = vst.msk [vmem:[%s181_s18] sm:$0x1] %vm223_vm2, %v1141_v58  ;;  %v1171_v60 = vadd.f32 %v1170_v59, %v1169_v57 }
 0x149   : > { %1172 = vst.msk [vmem:[%s181_s18 + $0x1] sm:$0x1] %vm223_vm2, %v1171_v60 }
 0x14a PF: > { %s14_s12 = sadd.s32 1, %s1434_s12  }
 0x14b   : > { %p11_p4 = scmp.ge.s32.totalorder %s14_s12, 4  }
 0x14d   :  { %13 = sbr.rel (!%p11_p4) target bundleno = 1 (0x1), region = 150 }

// kernel: _lambda_.4
= control target key start
LH: loop header
LB: loop body
LE: loop exit
PB: predicated region body
PF: predicated region fallthrough
CT: control target
= control target key end

     0   :  { %s1396_s18 = smov 0   ;;  %s1736_s0 = inlined_call_operand.vmem [shape: f32[2,8,8,4], index: 0, kind: input, shape index: {}]   ;;  %s1737_s1 = inlined_call_operand.vmem [shape: f32[9,4,8], index: 1, kind: input, shape index: {}]   ;;  %s1738_s2 = inlined_call_operand.vmem [shape: f32[1,4], index: 2, kind: input, shape index: {}]   ;;  %s1739_s3 = inlined_call_operand.vmem [shape: f32[1,4], index: 3, kind: input, shape index: {}]   ;;  %s1740_s4 = inlined_call_operand.vmem [shape: f32[2,8,64], index: 4, kind: output, shape index: {0}]   ;;  %s1741_s5 = inlined_call_operand.vmem [shape: f32[2,2,8], index: 5, kind: output, shape index: {1}]  }
   0x1 LB: > { %s1242_s19 = sadd.s32 4294967295, %s1363_s18   ;;  %p1246_p0 = scmp.ge.s32.totalorder %s1363_s18, 1  ;;  %s1363_s18 = sphi %s1396_s18, %s16_s18  }
   0x2   : > { %p190_p1 = scmp.lt.s32.totalorder %s1363_s18, 3 }
   0x4   : > { %p191_p2 = pnand %p1246_p0, %p190_p1 }
   0x5   : > { %p221_p3 = scmp.lt.s32.totalorder (!%p191_p2), %s1242_s19, 1 }
   0x6   : > { %194 = sbr.rel (%p191_p2) target bundleno = 419 (0x1a3), region = 36 }
   0xb   : > { %v1251_v0 = vld [vmem:[%s1737_s1 + $0x4] sm:$0xf]  ;;  %vm354_vm0 = vcmask 1043456   ;;  %v1412_v1 = vld [vmem:[%s1738_s2] ss:$0 sm:$0xff]  ;;  %s1743_s19 = smov (!%p221_p3, %s1242_s19), 1 }
   0xc   : > { %1343 = vmatpush.msk.msra.mxu1 %vm354_vm0, %v1251_v0  ;;  %1344 = vmatpush.msk.msra.mxu2 %vm354_vm0, %v1251_v0  ;;  %vm274_vm1 = vcmask 31744   ;;  %v1270_v2 = vld [vmem:[%s1737_s1 + $0x8] sm:$0xf]  ;;  %v1280_v3 = vld [vmem:[%s1737_s1 + $0xc] sm:$0xf]  ;;  %vm276_vm2 = vcmask 25600  }
   0xd   : > { %1345 = vmatpush.msk.msra.mxu3 %vm354_vm0, %v1251_v0  ;;  %1252 = vmatpush.msk.msra.mxu0 %vm354_vm0, %v1251_v0  ;;  %v319_v4 = vld [vmem:[%s1737_s1] sm:$0xf]  ;;  %v1290_v5 = vld [vmem:[%s1737_s1 + $0x10] sm:$0xf]  ;;  %s1342_s7 = sshll.u32 %s1743_s19, 6  ;;  %v1365_v6 = vmov 0.0  }
   0xe   : > { %1271 = vmatpush.msk.msrb.mxu2 %vm354_vm0, %v1270_v2  ;;  %1261 = vmatpush.msk.msrb.mxu1 %vm354_vm0, %v319_v4  ;;  %275 = vst.msk [vmem:[#allocation2] sm:$0xff] %vm274_vm1, %v1365_v6  ;;  %s1440_s10 = scalar_lea.vmem %s1736_s0, %s1342_s7  ;;  %v1445_v7 = vld [vmem:[%s1739_s3] ss:$0 sm:$0xff]  ;;  %vm281_vm3 = vcmask 24576   ;;  %v1300_v35 = vld [vmem:[%s1737_s1 + $0x14] sm:$0xf] }
   0xf   : > { %1281 = vmatpush.msk.msrb.mxu3 %vm354_vm0, %v1280_v3  ;;  %1291 = vmatpush.msk.msrb.mxu0 %vm354_vm0, %v1290_v5  ;;  %277 = vst.msk [vmem:[#allocation2 + $0x8] sm:$0x3] %vm276_vm2, %v1365_v6  ;;  %v235_v8 = vld [vmem:[%s1440_s10 + $0x8] sm:$0xff]  ;;  %v237_v9 = vld [vmem:[%s1440_s10 + $0x18] sm:$0xff]  ;;  %v236_v14 = vld [vmem:[%s1440_s10 + $0x10] sm:$0xff]  ;;  %vm1070_vm4 = vcmask 64512  }
  0x10   : > { %v239_v10 = vld [vmem:[%s1440_s10 + $0x28] sm:$0xff]  ;;  %279 = vst.msk [vmem:[#allocation2 + $0x90] sm:$0xff] %vm274_vm1, %v1365_v6  ;;  %v247_v11 = vmul.f32 %v1412_v1, %v235_v8  ;;  %v249_v12 = vmul.f32 %v1412_v1, %v237_v9  ;;  %v238_v15 = vld [vmem:[%s1440_s10 + $0x20] sm:$0xff]  ;;  %v240_v16 = vld [vmem:[%s1440_s10 + $0x30] sm:$0xff]  ;;  %v248_v17 = vmul.f32 %v1412_v1, %v236_v14  ;;  %s1250_s23 = sshll.u32 %s1743_s19, 1  ;;  %vm1092_vm5 = vcmask 57344  }
  0x11   : > { %v251_v13 = vmul.f32 %v1412_v1, %v239_v10  ;;  %280 = vst.msk [vmem:[#allocation2 + $0x98] sm:$0x3] %vm276_vm2, %v1365_v6  ;;  %v250_v18 = vmul.f32 %v1412_v1, %v238_v15  ;;  %v252_v19 = vmul.f32 %v1412_v1, %v240_v16  ;;  %v1330_v33 = vld [vmem:[%s1737_s1 + $0x20] sm:$0xf]  ;;  %v1310_v37 = vld [vmem:[%s1737_s1 + $0x18] sm:$0xf]  ;;  %s233_s26 = scalar_lea.vmem %s1741_s5, %s1250_s23 }
  0x12   : > { %282 = vst.msk [vmem:[#allocation2] sm:$0x1] %vm281_vm3, %v1365_v6  ;;  %v259_v20 = vadd.f32 %v1445_v7, %v247_v11  ;;  %v261_v21 = vadd.f32 %v1445_v7, %v249_v12  ;;  %v260_v23 = vadd.f32 %v1445_v7, %v248_v17  ;;  %v234_v34 = vld [vmem:[%s1440_s10] sm:$0xff]  ;;  %v1320_v39 = vld [vmem:[%s1737_s1 + $0x1c] sm:$0xf]  ;;  %s1249_s27 = sshll.u32 %s1743_s19, 3 }
  0x13   : > { %v263_v22 = vadd.f32 %v1445_v7, %v251_v13  ;;  %283 = vst.msk [vmem:[#allocation2 + $0x10] sm:$0x1] %vm281_vm3, %v1365_v6  ;;  %v262_v24 = vadd.f32 %v1445_v7, %v250_v18  ;;  %v264_v25 = vadd.f32 %v1445_v7, %v252_v19  ;;  %v246_v41 = vmul.f32 %v1412_v1, %v234_v34  ;;  %v241_v54 = vld [vmem:[%s1440_s10 + $0x38] sm:$0xff]  ;;  %s229_s30 = scalar_lea.vmem %s1740_s4, %s1249_s27 }
  0x14   : > { %284 = vst.msk [vmem:[#allocation2 + $0x20] sm:$0x1] %vm281_vm3, %v1365_v6  ;;  %v267_v26 = vmax.f32 %v259_v20, 0.0  ;;  %v269_v27 = vmax.f32 %v261_v21, 0.0  ;;  %v268_v29 = vmax.f32 %v260_v23, 0.0  ;;  %v253_v55 = vmul.f32 %v1412_v1, %v241_v54 }
  0x15   : > { %v271_v28 = vmax.f32 %v263_v22, 0.0  ;;  %285 = vst.msk [vmem:[#allocation2 + $0x30] sm:$0x1] %vm281_vm3, %v1365_v6  ;;  %v270_v31 = vmax.f32 %v262_v24, 0.0  ;;  %v272_v32 = vmax.f32 %v264_v25, 0.0  ;;  %v258_v43 = vadd.f32 %v1445_v7, %v246_v41 }
  0x16   : > { %v320_v30 = vld [vmem:[#allocation2 + $0x1] sm:$0xff]  ;;  %286 = vst.msk [vmem:[#allocation2 + $0x40] sm:$0x1] %vm281_vm3, %v1365_v6  ;;  %v265_v56 = vadd.f32 %v1445_v7, %v253_v55  ;;  %vm1156_vm6 = vcmask 523264  }
  0x17   : > { %304 = vst.msk [vmem:[#allocation2 + $0x21] sm:$0xff] %vm274_vm1, %v267_v26  ;;  %1253 = vmatmul.msk.f32.vlgmr.msra.gmra.mxu0 %vm274_vm1, %v320_v30  ;;  %v266_v46 = vmax.f32 %v258_v43, 0.0 }
  0x18   : > { %306 = vst.msk [vmem:[#allocation2 + $0x41] sm:$0xff] %vm274_vm1, %v269_v27  ;;  %1331 = vmatpush.msk.msra.mxu0 %vm354_vm0, %v1330_v33  ;;  %v273_v58 = vmax.f32 %v265_v56, 0.0  ;;  %v905_v13 = vld [vmem:[#allocation2 + $0x91] sm:$0xff] }
  0x19   : > { %308 = vst.msk [vmem:[#allocation2 + $0x61] sm:$0xff] %vm274_vm1, %v271_v28  ;;  %v311_v47 = vld [vmem:[#allocation2] sm:$0xff] }
  0x1a   : > { %305 = vst.msk [vmem:[#allocation2 + $0x31] sm:$0xff] %vm274_vm1, %v268_v29 }
  0x1b   : > { %307 = vst.msk [vmem:[#allocation2 + $0x51] sm:$0xff] %vm274_vm1, %v270_v31 }
  0x1c   : > { %309 = vst.msk [vmem:[#allocation2 + $0x71] sm:$0xff] %vm274_vm1, %v272_v32 }
  0x1d   : > { %287 = vst.msk [vmem:[#allocation2 + $0x50] sm:$0x1] %vm281_vm3, %v1365_v6 }
  0x1e   : > { %v1498_v36 = vld [vmem:[#allocation2 + $0x21] sm:$0xff]  ;;  %288 = vst.msk [vmem:[#allocation2 + $0x60] sm:$0x1] %vm281_vm3, %v1365_v6 }
  0x1f   : > { %1255 = vmatmul.msk.f32.vlgmr.msra.gmra.mxu1 %vm274_vm1, %v1498_v36  ;;  %v1507_v38 = vld [vmem:[#allocation2 + $0x41] sm:$0xff]  ;;  %289 = vst.msk [vmem:[#allocation2 + $0x70] sm:$0x1] %vm281_vm3, %v1365_v6 }
  0x20   : > { %1257 = vmatmul.msk.f32.vlgmr.msra.gmra.mxu2 %vm274_vm1, %v1507_v38  ;;  %v1516_v40 = vld [vmem:[#allocation2 + $0x61] sm:$0xff]  ;;  %290 = vst.msk [vmem:[#allocation2 + $0x80] sm:$0x1] %vm281_vm3, %v1365_v6  ;;  %1301 = vmatpush.msk.msra.mxu1 %vm354_vm0, %v1300_v35 }
  0x21   : > { %1259 = vmatmul.msk.f32.vlgmr.msra.gmra.mxu3 %vm274_vm1, %v1516_v40  ;;  %291 = vst.msk [vmem:[#allocation2 + $0x90] sm:$0x1] %vm281_vm3, %v1365_v6  ;;  %1311 = vmatpush.msk.msra.mxu2 %vm354_vm0, %v1310_v37  ;;  %v1532_v42 = vld [vmem:[#allocation2 + $0x31] sm:$0xff]  ;;  %v554_v52 = vld [vmem:[#allocation2 + $0x20] sm:$0xff] }
  0x22   : > { %292 = vst.msk [vmem:[#allocation2 + $0x9] sm:$0x1] %vm281_vm3, %v1365_v6  ;;  %1321 = vmatpush.msk.msra.mxu3 %vm354_vm0, %v1320_v39  ;;  %v1537_v44 = vld [vmem:[#allocation2 + $0x51] sm:$0xff]  ;;  %v556_v60 = vld [vmem:[#allocation2 + $0x40] sm:$0xff] }
  0x23   : > { %293 = vst.msk [vmem:[#allocation2 + $0x19] sm:$0x1] %vm281_vm3, %v1365_v6  ;;  %v1541_v45 = vld [vmem:[#allocation2 + $0x71] sm:$0xff] }
  0x24   : > { %294 = vst.msk [vmem:[#allocation2 + $0x29] sm:$0x1] %vm281_vm3, %v1365_v6  ;;  %v555_v57 = vld [vmem:[#allocation2 + $0x30] sm:$0xff] }
  0x25   : > { %295 = vst.msk [vmem:[#allocation2 + $0x39] sm:$0x1] %vm281_vm3, %v1365_v6  ;;  %v557_v62 = vld [vmem:[#allocation2 + $0x50] sm:$0xff]  ;;  %v558_v0 = vld [vmem:[#allocation2 + $0x60] sm:$0xff] }
  0x26   : > { %296 = vst.msk [vmem:[#allocation2 + $0x49] sm:$0x1] %vm281_vm3, %v1365_v6  ;;  %v559_v2 = vld [vmem:[#allocation2 + $0x70] sm:$0xff] }
  0x27   : > { %1256 = vmatmul.msk.f32.gmra.mxu1 %vm274_vm1, %v1532_v42  ;;  %297 = vst.msk [vmem:[#allocation2 + $0x59] sm:$0x1] %vm281_vm3, %v1365_v6 }
  0x28   : > { %1258 = vmatmul.msk.f32.gmra.mxu2 %vm274_vm1, %v1537_v44  ;;  %298 = vst.msk [vmem:[#allocation2 + $0x69] sm:$0x1] %vm281_vm3, %v1365_v6  ;;  %v819_v11 = vld [vmem:[#allocation2 + $0x90] sm:$0xff] }
  0x29   : > { %1260 = vmatmul.msk.f32.gmra.mxu3 %vm274_vm1, %v1541_v45  ;;  %299 = vst.msk [vmem:[#allocation2 + $0x79] sm:$0x1] %vm281_vm3, %v1365_v6  ;;  %v467_v48 = vld [vmem:[#allocation2 + $0x2] sm:$0xff] }
  0x2a   : > { %300 = vst.msk [vmem:[#allocation2 + $0x89] sm:$0x1] %vm281_vm3, %v1365_v6 }
  0x2b   : > { %301 = vst.msk [vmem:[#allocation2 + $0x99] sm:$0x1] %vm281_vm3, %v1365_v6  ;;  %v469_v53 = vld [vmem:[#allocation2 + $0x22] sm:$0xff] }
  0x2c   : > { %303 = vst.msk [vmem:[#allocation2 + $0x11] sm:$0xff] %vm274_vm1, %v266_v46  ;;  %v470_v59 = vld [vmem:[#allocation2 + $0x32] sm:$0xff] }
  0x2d   : > { %310 = vst.msk [vmem:[#allocation2 + $0x81] sm:$0xff] %vm274_vm1, %v273_v58  ;;  %v471_v61 = vld [vmem:[#allocation2 + $0x42] sm:$0xff] }
  0x2e   : > { %v472_v63 = vld [vmem:[#allocation2 + $0x52] sm:$0xff] }
  0x2f   : > { %1262 = vmatmul.msk.f32.vlgmr.msrb.gmra.mxu1 %vm274_vm1, %v311_v47  ;;  %v473_v1 = vld [vmem:[#allocation2 + $0x62] sm:$0xff] }
  0x30   : > { %1272 = vmatmul.msk.f32.vlgmr.msrb.gmra.mxu2 %vm274_vm1, %v467_v48  ;;  %v474_v3 = vld [vmem:[#allocation2 + $0x72] sm:$0xff] }
  0x32   : > { %v991_v18 = vld [vmem:[#allocation2 + $0x92] sm:$0xff] }
  0x33   : > { %v321_v49 = vld [vmem:[#allocation2 + $0x11] sm:$0xff] }
  0x34   : > { %v553_v50 = vld [vmem:[#allocation2 + $0x10] sm:$0xff]  ;;  %1254 = vmatmul.msk.f32.gmra.mxu0 %vm274_vm1, %v321_v49  ;;  %v560_v4 = vld [vmem:[#allocation2 + $0x80] sm:$0xff] }
  0x35   : > { %1282 = vmatmul.msk.f32.vlgmr.msrb.gmra.mxu3 %vm274_vm1, %v553_v50  ;;  %v468_v51 = vld [vmem:[#allocation2 + $0x12] sm:$0xff]  ;;  %v646_v5 = vld [vmem:[#allocation2 + $0x81] sm:$0xff] }
  0x36   : > { %v732_v10 = vld [vmem:[#allocation2 + $0x82] sm:$0xff] }
  0x37   : > { %1263 = vmatmul.msk.f32.gmra.mxu1 %vm274_vm1, %v553_v50 }
  0x38   : > { %1273 = vmatmul.msk.f32.gmra.mxu2 %vm274_vm1, %v468_v51 }
  0x3c   : > { %1292 = vmatmul.msk.f32.vlgmr.msrb.gmra.mxu0 %vm274_vm1, %v321_v49 }
  0x3d   : > { %1283 = vmatmul.msk.f32.gmra.mxu3 %vm274_vm1, %v554_v52 }
  0x3f   : > { %1264 = vmatmul.msk.f32.gmra.mxu1 %vm274_vm1, %v554_v52 }
  0x40   : > { %1274 = vmatmul.msk.f32.gmra.mxu2 %vm274_vm1, %v469_v53 }
  0x44   : > { %1293 = vmatmul.msk.f32.gmra.mxu0 %vm274_vm1, %v1498_v36 }
  0x45   : > { %1284 = vmatmul.msk.f32.gmra.mxu3 %vm274_vm1, %v555_v57 }
  0x47   : > { %1265 = vmatmul.msk.f32.gmra.mxu1 %vm274_vm1, %v555_v57 }
  0x48   : > { %1275 = vmatmul.msk.f32.gmra.mxu2 %vm274_vm1, %v470_v59 }
  0x4c   : > { %1294 = vmatmul.msk.f32.gmra.mxu0 %vm274_vm1, %v1532_v42 }
  0x4d   : > { %1285 = vmatmul.msk.f32.gmra.mxu3 %vm274_vm1, %v556_v60 }
  0x4f   : > { %1266 = vmatmul.msk.f32.gmra.mxu1 %vm274_vm1, %v556_v60 }
  0x50   : > { %1276 = vmatmul.msk.f32.gmra.mxu2 %vm274_vm1, %v471_v61 }
  0x54   : > { %1295 = vmatmul.msk.f32.gmra.mxu0 %vm274_vm1, %v1507_v38 }
  0x55   : > { %1286 = vmatmul.msk.f32.gmra.mxu3 %vm274_vm1, %v557_v62 }
  0x57   : > { %1267 = vmatmul.msk.f32.gmra.mxu1 %vm274_vm1, %v557_v62 }
  0x58   : > { %1277 = vmatmul.msk.f32.gmra.mxu2 %vm274_vm1, %v472_v63 }
  0x5c   : > { %1296 = vmatmul.msk.f32.gmra.mxu0 %vm274_vm1, %v1537_v44 }
  0x5d   : > { %1287 = vmatmul.msk.f32.gmra.mxu3 %vm274_vm1, %v558_v0 }
  0x5f   : > { %1268 = vmatmul.msk.f32.gmra.mxu1 %vm274_vm1, %v558_v0 }
  0x60   : > { %1278 = vmatmul.msk.f32.gmra.mxu2 %vm274_vm1, %v473_v1 }
  0x64   : > { %1297 = vmatmul.msk.f32.gmra.mxu0 %vm274_vm1, %v1516_v40 }
  0x65   : > { %1288 = vmatmul.msk.f32.gmra.mxu3 %vm274_vm1, %v559_v2 }
  0x67   : > { %1269 = vmatmul.msk.f32.gmra.mxu1 %vm274_vm1, %v559_v2 }
  0x68   : > { %1279 = vmatmul.msk.f32.gmra.mxu2 %vm274_vm1, %v474_v3 }
  0x6c   : > { %1298 = vmatmul.msk.f32.gmra.mxu0 %vm274_vm1, %v1541_v45 }
  0x6d   : > { %1289 = vmatmul.msk.f32.gmra.mxu3 %vm274_vm1, %v560_v4 }
  0x6f   : > { %1302 = vmatmul.msk.f32.vlgmr.msra.gmra.mxu1 %vm274_vm1, %v468_v51 }
  0x70   : > { %1312 = vmatmul.msk.f32.vlgmr.msra.gmra.mxu2 %vm274_vm1, %v554_v52 }
  0x74   : > { %1299 = vmatmul.msk.f32.gmra.mxu0 %vm274_vm1, %v646_v5 }
  0x75   : > { %1322 = vmatmul.msk.f32.vlgmr.msra.gmra.mxu3 %vm274_vm1, %v1498_v36 }
  0x77   : > { %1303 = vmatmul.msk.f32.gmra.mxu1 %vm274_vm1, %v469_v53 }
  0x78   : > { %1313 = vmatmul.msk.f32.gmra.mxu2 %vm274_vm1, %v555_v57 }
  0x7c   : > { %1332 = vmatmul.msk.f32.vlgmr.msra.gmra.mxu0 %vm274_vm1, %v469_v53 }
  0x7d   : > { %1323 = vmatmul.msk.f32.gmra.mxu3 %vm274_vm1, %v1532_v42 }
  0x7f   : > { %1304 = vmatmul.msk.f32.gmra.mxu1 %vm274_vm1, %v470_v59 }
  0x80   : > { %1314 = vmatmul.msk.f32.gmra.mxu2 %vm274_vm1, %v556_v60 }
  0x84   : > { %1333 = vmatmul.msk.f32.gmra.mxu0 %vm274_vm1, %v470_v59 }
  0x85   : > { %1324 = vmatmul.msk.f32.gmra.mxu3 %vm274_vm1, %v1507_v38 }
  0x87   : > { %1305 = vmatmul.msk.f32.gmra.mxu1 %vm274_vm1, %v471_v61 }
  0x88   : > { %1315 = vmatmul.msk.f32.gmra.mxu2 %vm274_vm1, %v557_v62 }
  0x8c   : > { %1334 = vmatmul.msk.f32.gmra.mxu0 %vm274_vm1, %v471_v61 }
  0x8d   : > { %1325 = vmatmul.msk.f32.gmra.mxu3 %vm274_vm1, %v1537_v44 }
  0x8f   : > { %1306 = vmatmul.msk.f32.gmra.mxu1 %vm274_vm1, %v472_v63 }
  0x90   : > { %1316 = vmatmul.msk.f32.gmra.mxu2 %vm274_vm1, %v558_v0 }
  0x94   : > { %1335 = vmatmul.msk.f32.gmra.mxu0 %vm274_vm1, %v472_v63  ;;  %v375_v12 = vpop.f32.mrf.mxu0 }
  0x95   : > { %1326 = vmatmul.msk.f32.gmra.mxu3 %vm274_vm1, %v1516_v40 }
  0x97   : > { %1307 = vmatmul.msk.f32.gmra.mxu1 %vm274_vm1, %v473_v1 }
  0x98   : > { %1317 = vmatmul.msk.f32.gmra.mxu2 %vm274_vm1, %v559_v2 }
  0x9c   : > { %1336 = vmatmul.msk.f32.gmra.mxu0 %vm274_vm1, %v473_v1  ;;  %v1634_v6 = vpop.f32.mrf.mxu1 }
  0x9d   : > { %1327 = vmatmul.msk.f32.gmra.mxu3 %vm274_vm1, %v1541_v45 }
  0x9f   : > { %1308 = vmatmul.msk.f32.gmra.mxu1 %vm274_vm1, %v474_v3 }
  0xa0   : > { %1318 = vmatmul.msk.f32.gmra.mxu2 %vm274_vm1, %v560_v4 }
  0xa3   : > { %v1638_v7 = vpop.f32.mrf.mxu2 }
  0xa4   : > { %1337 = vmatmul.msk.f32.gmra.mxu0 %vm274_vm1, %v474_v3  ;;  %v1642_v8 = vpop.f32.mrf.mxu1  ;;  %v1644_v9 = vpop.f32.mrf.mxu3 }
  0xa5   : > { %1328 = vmatmul.msk.f32.gmra.mxu3 %vm274_vm1, %v646_v5 }
  0xa7   : > { %1309 = vmatmul.msk.f32.gmra.mxu1 %vm274_vm1, %v732_v10 }
  0xa8   : > { %1319 = vmatmul.msk.f32.gmra.mxu2 %vm274_vm1, %v819_v11 }
  0xab   : > { %v1648_v14 = vpop.f32.mrf.mxu2 }
  0xac   : > { %1338 = vmatmul.msk.f32.gmra.mxu0 %vm274_vm1, %v732_v10  ;;  %v443_v15 = vpop.f32.mrf.mxu1  ;;  %v1652_v16 = vpop.f32.mrf.mxu3 }
  0xad   : > { %1329 = vmatmul.msk.f32.gmra.mxu3 %vm274_vm1, %v905_v13  ;;  %v444_v45 = vadd.f32 %v443_v15, %v375_v12 }
  0xb1   : > { %v378_v17 = vpop.f32.mrf.mxu0 }
  0xb3   : > { %v521_v19 = vpop.f32.mrf.mxu2 }
  0xb4   : > { %1339 = vmatmul.msk.f32.gmra.mxu0 %vm274_vm1, %v991_v18  ;;  %v446_v20 = vpop.f32.mrf.mxu1  ;;  %v545_v47 = vadd.f32 %v521_v19, %v444_v45 }
  0xb5   : > { %v447_v52 = vadd.f32 %v446_v20, %v378_v17 }
  0xb8   : > { %v607_v21 = vpop.f32.mrf.mxu3 }
  0xb9   : > { %v693_v22 = vpop.f32.mrf.mxu0  ;;  %v631_v50 = vadd.f32 %v607_v21, %v545_v47 }
  0xbb   : > { %v524_v23 = vpop.f32.mrf.mxu2  ;;  %v717_v54 = vadd.f32 %v693_v22, %v631_v50 }
  0xbc   : > { %v449_v24 = vpop.f32.mrf.mxu1  ;;  %v546_v55 = vadd.f32 %v524_v23, %v447_v52 }
  0xbd   : > { %v450_v62 = vadd.f32 %v449_v24, %v1634_v6 }
  0xc0   : > { %v610_v25 = vpop.f32.mrf.mxu3 }
  0xc1   : > { %v696_v26 = vpop.f32.mrf.mxu0  ;;  %v632_v59 = vadd.f32 %v610_v25, %v546_v55 }
  0xc3   : > { %v527_v27 = vpop.f32.mrf.mxu2  ;;  %v718_v0 = vadd.f32 %v696_v26, %v632_v59 }
  0xc4   : > { %v452_v28 = vpop.f32.mrf.mxu1  ;;  %v547_v1 = vadd.f32 %v527_v27, %v450_v62 }
  0xc5   : > { %v453_v15 = vadd.f32 %v452_v28, %v1642_v8 }
  0xc8   : > { %v613_v29 = vpop.f32.mrf.mxu3 }
  0xc9   : > { %v699_v30 = vpop.f32.mrf.mxu0  ;;  %v633_v11 = vadd.f32 %v613_v29, %v547_v1 }
  0xcb   : > { %v530_v31 = vpop.f32.mrf.mxu2  ;;  %v719_v19 = vadd.f32 %v699_v30, %v633_v11 }
  0xcc   : > { %v455_v32 = vpop.f32.mrf.mxu1  ;;  %v548_v17 = vadd.f32 %v530_v31, %v453_v15 }
  0xcd   : > { %v456_v28 = vadd.f32 %v455_v32, %v1638_v7 }
  0xd0   : > { %v616_v33 = vpop.f32.mrf.mxu3 }
  0xd1   : > { %v1655_v34 = vpop.f32.mrf.mxu0  ;;  %v634_v24 = vadd.f32 %v616_v33, %v548_v17 }
  0xd3   : > { %v1657_v35 = vpop.f32.mrf.mxu2  ;;  %v720_v33 = vadd.f32 %v1655_v34, %v634_v24 }
  0xd4   : > { %v1659_v36 = vpop.f32.mrf.mxu1  ;;  %v549_v52 = vadd.f32 %v1657_v35, %v456_v28 }
  0xd8   : > { %v1661_v37 = vpop.f32.mrf.mxu3 }
  0xd9   : > { %v1663_v38 = vpop.f32.mrf.mxu0 }
  0xdb   : > { %v1665_v39 = vpop.f32.mrf.mxu2 }
  0xdc   : > { %v1667_v40 = vpop.f32.mrf.mxu1 }
  0xe0   : > { %v1669_v41 = vpop.f32.mrf.mxu3 }
  0xe1   : > { %v1671_v42 = vpop.f32.mrf.mxu0 }
  0xe3   : > { %v1673_v43 = vpop.f32.mrf.mxu2 }
  0xe4   : > { %v1675_v44 = vpop.f32.mrf.mxu1 }
  0xe8   : > { %v1677_v46 = vpop.f32.mrf.mxu3 }
  0xe9   : > { %v1679_v48 = vpop.f32.mrf.mxu0 }
  0xeb   : > { %v1681_v49 = vpop.f32.mrf.mxu2 }
  0xec   : > { %v779_v51 = vpop.f32.mrf.mxu1 }
  0xed   : > { %v803_v57 = vadd.f32 %v779_v51, %v717_v54 }
  0xf0   : > { %v1683_v53 = vpop.f32.mrf.mxu3 }
  0xf1   : > { %v1685_v56 = vpop.f32.mrf.mxu0 }
  0xf3   : > { %v866_v58 = vpop.f32.mrf.mxu2 }
  0xf4   : > { %v890_v60 = vadd.f32 %v866_v58, %v803_v57  ;;  %v782_v61 = vpop.f32.mrf.mxu1 }
  0xf5   : > { %v804_v4 = vadd.f32 %v782_v61, %v718_v0  ;;  %v459_v0 = vadd.f32 %v1659_v36, %v1648_v14 }
  0xf8   : > { %v952_v63 = vpop.f32.mrf.mxu3 }
  0xf9   : > { %v976_v2 = vadd.f32 %v952_v63, %v890_v60  ;;  %v1038_v3 = vpop.f32.mrf.mxu0  ;;  %v635_v60 = vadd.f32 %v1661_v37, %v549_v52 }
  0xfb   : > { %v1062_v5 = vadd.f32 %v1038_v3, %v976_v2  ;;  %v869_v10 = vpop.f32.mrf.mxu2  ;;  %v721_v2 = vadd.f32 %v1663_v38, %v635_v60  ;;  %v550_v3 = vadd.f32 %v1665_v39, %v459_v0 }
  0xfc   : > { %v891_v12 = vadd.f32 %v869_v10, %v804_v4  ;;  %v785_v13 = vpop.f32.mrf.mxu1 }
  0xfd   : > { %1124 = vxpose.xlu0.b32.start [1/8] (short) (narrow) %v1062_v5, 8  ;;  %v1094_v21 = vmul.f32 %v1062_v5, %v1062_v5  ;;  %v805_v22 = vadd.f32 %v785_v13, %v719_v19  ;;  %v1071_v26 = vsel %vm1070_vm4, %v1062_v5, 0.0 }
  0xff   : > { %v1102_v30 = vsel %vm1070_vm4, %v1094_v21, 0.0 }
 0x100   : > { %v955_v18 = vpop.f32.mrf.mxu3 }
 0x101   : > { %v977_v20 = vadd.f32 %v955_v18, %v891_v12  ;;  %v1041_v6 = vpop.f32.mrf.mxu0  ;;  %v636_v12 = vadd.f32 %v1669_v41, %v550_v3  ;;  %v462_v18 = vadd.f32 %v1667_v40, %v1644_v9 }
 0x103   : > { %v1063_v23 = vadd.f32 %v1041_v6, %v977_v20  ;;  %v872_v25 = vpop.f32.mrf.mxu2  ;;  %v722_v20 = vadd.f32 %v1671_v42, %v636_v12  ;;  %v551_v6 = vadd.f32 %v1673_v43, %v462_v18 }
 0x104   : > { %v892_v45 = vadd.f32 %v872_v25, %v805_v22  ;;  %v788_v47 = vpop.f32.mrf.mxu1 }
 0x105   : > { %v1072_v27 = vsel %vm1070_vm4, %v1063_v23, 0.0  ;;  %v1095_v29 = vmul.f32 %v1063_v23, %v1063_v23  ;;  %1125 = vxpose.xlu0.b32.cont [2/8] (short) (narrow) %v1063_v23, 8  ;;  %v806_v57 = vadd.f32 %v788_v47, %v720_v33  ;;  %v637_v25 = vadd.f32 %v1677_v46, %v551_v6 }
 0x106   : > { %v1073_v8 = vadd.f32 %v1072_v27, %v1071_v26 }
 0x107   : > { %v1103_v31 = vsel %vm1070_vm4, %v1095_v29, 0.0 }
 0x108   : > { %v1104_v50 = vadd.f32 %v1103_v31, %v1102_v30  ;;  %v958_v51 = vpop.f32.mrf.mxu3 }
 0x109   : > { %v978_v54 = vadd.f32 %v958_v51, %v892_v45  ;;  %v1044_v55 = vpop.f32.mrf.mxu0  ;;  %v465_v45 = vadd.f32 %v1675_v44, %v1652_v16 }
 0x10b   : > { %v1064_v58 = vadd.f32 %v1044_v55, %v978_v54  ;;  %v875_v59 = vpop.f32.mrf.mxu2  ;;  %v552_v28 = vadd.f32 %v1681_v49, %v465_v45 }
 0x10c   : > { %v893_v32 = vadd.f32 %v875_v59, %v806_v57  ;;  %v791_v62 = vpop.f32.mrf.mxu1 }
 0x10d   : > { %v1074_v61 = vsel %vm1070_vm4, %v1064_v58, 0.0  ;;  %v1096_v7 = vmul.f32 %v1064_v58, %v1064_v58  ;;  %1126 = vxpose.xlu0.b32.cont [3/8] (short) (narrow) %v1064_v58, 8  ;;  %v807_v5 = vadd.f32 %v791_v62, %v721_v2  ;;  %v638_v33 = vadd.f32 %v1683_v53, %v552_v28 }
 0x10e   : > { %v1075_v63 = vadd.f32 %v1074_v61, %v1073_v8  ;;  %v723_v8 = vadd.f32 %v1679_v48, %v637_v25 }
 0x10f   : > { %v1105_v34 = vsel %vm1070_vm4, %v1096_v7, 0.0  ;;  %v724_v49 = vadd.f32 %v1685_v56, %v638_v33 }
 0x110   : > { %v1106_v35 = vadd.f32 %v1105_v34, %v1104_v50  ;;  %v961_v1 = vpop.f32.mrf.mxu3 }
 0x111   : > { %v979_v4 = vadd.f32 %v961_v1, %v893_v32  ;;  %v1047_v37 = vpop.f32.mrf.mxu0 }
 0x113   : > { %v1065_v10 = vadd.f32 %v1047_v37, %v979_v4  ;;  %v878_v11 = vpop.f32.mrf.mxu2 }
 0x114   : > { %v894_v14 = vadd.f32 %v878_v11, %v807_v5  ;;  %v794_v36 = vpop.f32.mrf.mxu1 }
 0x115   : > { %v1076_v13 = vsel %vm1070_vm4, %v1065_v10, 0.0  ;;  %v1097_v15 = vmul.f32 %v1065_v10, %v1065_v10  ;;  %1127 = vxpose.xlu0.b32.cont [4/8] (short) (narrow) %v1065_v10, 8  ;;  %v808_v22 = vadd.f32 %v794_v36, %v722_v20 }
 0x116   : > { %v1077_v17 = vadd.f32 %v1076_v13, %v1075_v63 }
 0x117   : > { %v1107_v38 = vsel %vm1070_vm4, %v1097_v15, 0.0 }
 0x118   : > { %v1108_v39 = vadd.f32 %v1107_v38, %v1106_v35  ;;  %v964_v19 = vpop.f32.mrf.mxu3 }
 0x119   : > { %v980_v21 = vadd.f32 %v964_v19, %v894_v14  ;;  %v1050_v41 = vpop.f32.mrf.mxu0 }
 0x11b   : > { %v1066_v23 = vadd.f32 %v1050_v41, %v980_v21  ;;  %v881_v24 = vpop.f32.mrf.mxu2 }
 0x11c   : > { %v895_v9 = vadd.f32 %v881_v24, %v808_v22  ;;  %v797_v29 = vpop.f32.mrf.mxu1 }
 0x11d   : > { %v1078_v26 = vsel %vm1070_vm4, %v1066_v23, 0.0  ;;  %v1098_v27 = vmul.f32 %v1066_v23, %v1066_v23  ;;  %1128 = vxpose.xlu0.b32.cont [5/8] (short) (narrow) %v1066_v23, 8  ;;  %v809_v31 = vadd.f32 %v797_v29, %v723_v8 }
 0x11e   : > { %v1079_v40 = vadd.f32 %v1078_v26, %v1077_v17 }
 0x11f   : > { %v1109_v42 = vsel %vm1070_vm4, %v1098_v27, 0.0 }
 0x120   : > { %v1110_v43 = vadd.f32 %v1109_v42, %v1108_v39  ;;  %v967_v47 = vpop.f32.mrf.mxu3 }
 0x121   : > { %v981_v30 = vadd.f32 %v967_v47, %v895_v9  ;;  %v1053_v46 = vpop.f32.mrf.mxu0 }
 0x123   : > { %v1067_v50 = vadd.f32 %v1053_v46, %v981_v30  ;;  %v884_v51 = vpop.f32.mrf.mxu2 }
 0x124   : > { %v896_v16 = vadd.f32 %v884_v51, %v809_v31  ;;  %v800_v58 = vpop.f32.mrf.mxu1 }
 0x125   : > { %v1080_v52 = vsel %vm1070_vm4, %v1067_v50, 0.0  ;;  %v1099_v54 = vmul.f32 %v1067_v50, %v1067_v50  ;;  %1129 = vxpose.xlu0.b32.cont [6/8] (short) (narrow) %v1067_v50, 8  ;;  %v810_v61 = vadd.f32 %v800_v58, %v724_v49 }
 0x126   : > { %v1081_v44 = vadd.f32 %v1080_v52, %v1079_v40 }
 0x127   : > { %v1111_v55 = vsel %vm1070_vm4, %v1099_v54, 0.0 }
 0x128   : > { %v1112_v57 = vadd.f32 %v1111_v55, %v1110_v43  ;;  %v970_v48 = vpop.f32.mrf.mxu3 }
 0x129   : > { %v982_v59 = vadd.f32 %v970_v48, %v896_v16  ;;  %v1056_v60 = vpop.f32.mrf.mxu0 }
 0x12b   : > { %v1068_v7 = vadd.f32 %v1056_v60, %v982_v59  ;;  %v887_v32 = vpop.f32.mrf.mxu2 }
 0x12c   : > { %v897_v63 = vadd.f32 %v887_v32, %v810_v61 }
 0x12d   : > { %v1082_v53 = vsel %vm1070_vm4, %v1068_v7, 0.0  ;;  %v1100_v62 = vmul.f32 %v1068_v7, %v1068_v7  ;;  %1130 = vxpose.xlu0.b32.cont [7/8] (short) (narrow) %v1068_v7, 8 }
 0x12e   : > { %v1083_v0 = vadd.f32 %v1082_v53, %v1081_v44 }
 0x12f   : > { %v1113_v34 = vsel %vm1070_vm4, %v1100_v62, 0.0 }
 0x130   : > { %v1114_v35 = vadd.f32 %v1113_v34, %v1112_v57  ;;  %v973_v1 = vpop.f32.mrf.mxu3 }
 0x131   : > { %v983_v2 = vadd.f32 %v973_v1, %v897_v63  ;;  %v1059_v3 = vpop.f32.mrf.mxu0 }
 0x133   : > { %v1069_v4 = vadd.f32 %v1059_v3, %v983_v2 }
 0x135   : > { %v1084_v56 = vsel %vm1070_vm4, %v1069_v4, 0.0  ;;  %v1101_v37 = vmul.f32 %v1069_v4, %v1069_v4  ;;  %1131 = vxpose.xlu0.b32.end [8/8] (short) (narrow) %v1069_v4, 8 }
 0x136   : > { %v1085_v5 = vadd.f32 %v1084_v56, %v1083_v0 }
 0x137   : > { %v1115_v10 = vsel %vm1070_vm4, %v1101_v37, 0.0 }
 0x138   : > { %v1086_v11 = vrot.slane %v1085_v5, 4  ;;  %v1116_v12 = vadd.f32 %v1115_v10, %v1114_v35 }
 0x13a   : > { %v1087_v13 = vadd.f32 %v1086_v11, %v1085_v5  ;;  %v1117_v15 = vrot.slane %v1116_v12, 4 }
 0x13c   : > { %v1088_v14 = vrot.slane %v1087_v13, 2  ;;  %v1118_v36 = vadd.f32 %v1117_v15, %v1116_v12 }
 0x13e   : > { %v1089_v17 = vadd.f32 %v1088_v14, %v1087_v13  ;;  %v1119_v18 = vrot.slane %v1118_v36, 2 }
 0x140   : > { %v1090_v38 = vrot.slane %v1089_v17, 1  ;;  %v1120_v39 = vadd.f32 %v1119_v18, %v1118_v36 }
 0x142   : > { %v1091_v19 = vadd.f32 %v1090_v38, %v1089_v17  ;;  %v1121_v20 = vrot.slane %v1120_v39, 1 }
 0x144   : > { %1093 = vst.msk [vmem:[%s233_s26] sm:$0x1] %vm1092_vm5, %v1091_v19  ;;  %v1122_v6 = vadd.f32 %v1121_v20, %v1120_v39 }
 0x146   : > { %1123 = vst.msk [vmem:[%s233_s26 + $0x1] sm:$0x1] %vm1092_vm5, %v1122_v6 }
 0x1a1   : > { %v1140_v21 = vpop.trf.xlu0 }
 0x1a2   : > { %1157 = vst.msk [vmem:[%s229_s30] sm:$0xff] %vm1156_vm6, %v1140_v21 }
 0x1a3 PF: > { %s16_s18 = sadd.s32 1, %s1363_s18  }
 0x1a4   : > { %p13_p4 = scmp.ge.s32.totalorder %s16_s18, 4  }
 0x1a6   :  { %15 = sbr.rel (!%p13_p4) target bundleno = 1 (0x1), region = 89 }

</bundles_post_ra>
